<compile_context>
chip_gen: v5e
topology: v5e:2x2
jax: 0.10.0
libtpu: 0.0.40
codegen_flags: <defaults>
</compile_context>

<pallas_src>
import math
import jax
import jax.numpy as jnp
from jax.experimental import pallas as pl
from jax.experimental.pallas import tpu as pltpu  # noqa: F401  (kept for TPU-specific tuning hooks)

# ----------------- config (small synthetic shapes) -----------------
B = 2                  # batch
H = W = 16             # backbone feature-map spatial size
HW = H * W
C_IN = 4               # backbone channels for this level
HIDDEN = 32            # transformer.d_model
NUM_GROUPS = 32        # GroupNorm(32, hidden_dim)
GROUP_SIZE = HIDDEN // NUM_GROUPS
NUM_CLASSES = 8
NUM_QUERIES = 16
NUM_DEC_LAYERS = 3     # transformer.decoder.num_layers -> num_pred
LBQ = NUM_DEC_LAYERS * B * NUM_QUERIES
GN_EPS = 1e-5
INV_SIG_EPS = 1e-5
USE_GROUP_MAT = GROUP_SIZE > 1   # static: GroupNorm(32, 32) -> False


# ----------------- fused kernel: input_proj + detection heads -----------------
def _fused_detr_kernel(feat_ref, hs_ref, refs_ref,
                       conv_w_ref, conv_b_ref, gamma_ref, beta_ref,
                       *args):
    # optional group-pooling matrix only present when GROUP_SIZE > 1
    if USE_GROUP_MAT:
        (gmat_ref, wm_ref, bm_ref, w2_ref, b2_ref, w3_ref, b3_ref,
         srcs_ref, head_ref) = args
    else:
        (wm_ref, bm_ref, w2_ref, b2_ref, w3_ref, b3_ref,
         srcs_ref, head_ref) = args

    # ---- input_proj: 1x1 conv (matmul over channels) + GroupNorm ----
    Bn, HWn, Cin = feat_ref.shape
    D = conv_w_ref.shape[1]

    x2d = feat_ref[...].reshape(Bn * HWn, Cin)                     # (B*HW, Cin) bf16
    y2d = jnp.dot(x2d, conv_w_ref[...],
                  preferred_element_type=jnp.float32) + conv_b_ref[...]
    y = y2d.reshape(Bn, HWn, D)                                    # (B, HW, D) f32

    n = float(HWn * GROUP_SIZE)
    s = jnp.sum(y, axis=1)                                         # (B, D)
    ss = jnp.sum(y * y, axis=1)                                    # (B, D)
    if USE_GROUP_MAT:
        gm = gmat_ref[...]                                         # (D, D)
        mean = jnp.dot(s, gm, preferred_element_type=jnp.float32) * (1.0 / n)
        ex2 = jnp.dot(ss, gm, preferred_element_type=jnp.float32) * (1.0 / n)
    else:
        # GroupNorm(32, 32): one channel per group -> per-channel stats,
        # group-pooling matrix is the identity, skip the matmuls entirely.
        mean = s * (1.0 / n)
        ex2 = ss * (1.0 / n)
    var = jnp.maximum(ex2 - mean * mean, 0.0)                      # clamp fp rounding
    inv_std = jax.lax.rsqrt(var + GN_EPS)                          # EUP slot
    srcs_ref[...] = ((y - mean[:, None, :]) * inv_std[:, None, :]
                     * gamma_ref[...] + beta_ref[...]).astype(srcs_ref.dtype)

    # ---- detection heads: class_embed + bbox_embed MLP (shared over levels) ----
    h = hs_ref[...]                                                # (L*B*Q, D) bf16

    # merged [bbox layer 1 | class_embed] matmul on the shared input h
    combined = jnp.dot(h, wm_ref[...],
                       preferred_element_type=jnp.float32) + bm_ref[...]  # (rows, D+C)
    x1 = jnp.maximum(combined[:, :D], 0.0)                         # relu(bbox layer 1)
    logits = combined[:, D:]                                       # class logits

    x2 = jnp.maximum(
        jnp.dot(x1.astype(jnp.bfloat16), w2_ref[...],
                preferred_element_type=jnp.float32) + b2_ref[...], 0.0)
    tmp = jnp.dot(x2.astype(jnp.bfloat16), w3_ref[...],
                  preferred_element_type=jnp.float32) + b3_ref[...]       # (rows, 4)

    # reference.shape[-1] == 2 path: tmp[..., :2] += inverse_sigmoid(reference)
    # refs are pre-padded with 0.5 in lanes 2:4, and inverse_sigmoid(0.5) == 0,
    # so a single (rows, 4) add implements the masked update.
    r = refs_ref[...]                                              # (rows, 4)
    rc = jnp.clip(r, 0.0, 1.0)
    inv_sig = jnp.log(jnp.maximum(rc, INV_SIG_EPS) /
                      jnp.maximum(1.0 - rc, INV_SIG_EPS))
    coord = jax.nn.sigmoid(tmp + inv_sig)                          # EUP slot

    # packed output: [logits | boxes] -> one store, one output pipeline
    head_ref[...] = jnp.concatenate([logits, coord], axis=-1).astype(head_ref.dtype)


def fused_detr_heads(feat_bf16, hs_flat_bf16, refs_pad, params):
    inputs = [feat_bf16, hs_flat_bf16, refs_pad,
              params["conv_w"], params["conv_b"],
              params["gn_gamma"], params["gn_beta"]]
    if USE_GROUP_MAT:
        inputs.append(params["group_mat"])
    inputs += [params["wm"], params["bm"], params["w2"], params["b2"],
               params["w3"], params["b3"]]
    return pl.pallas_call(
        _fused_detr_kernel,
        out_shape=(
            jax.ShapeDtypeStruct((B, HW, HIDDEN), jnp.float32),          # srcs
            jax.ShapeDtypeStruct((LBQ, NUM_CLASSES + 4), jnp.float32),   # [logits | boxes]
        ),
        # no grid / no BlockSpecs: single invocation, whole arrays resident in VMEM
    )(*inputs)


# ----------------- deterministic parameter construction -----------------
def make_params(key):
    ks = jax.random.split(key, 10)
    kf = 1.0 / math.sqrt(HIDDEN)

    # class_embed: Linear(hidden, num_classes); bias = -log((1-p)/p), p=0.01
    bias_value = -math.log((1 - 0.01) / 0.01)
    class_w = jax.random.uniform(ks[0], (HIDDEN, NUM_CLASSES), jnp.float32, -kf, kf)
    class_b = jnp.full((1, NUM_CLASSES), bias_value, jnp.float32)

    # bbox_embed: MLP(hidden, hidden, 4, 3); last layer zero-init, bias[2:] = -2
    w1 = jax.random.uniform(ks[1], (HIDDEN, HIDDEN), jnp.float32, -kf, kf)
    b1 = jax.random.uniform(ks[2], (1, HIDDEN), jnp.float32, -kf, kf)
    w2 = jax.random.uniform(ks[3], (HIDDEN, HIDDEN), jnp.float32, -kf, kf)
    b2 = jax.random.uniform(ks[4], (1, HIDDEN), jnp.float32, -kf, kf)
    w3 = jnp.zeros((HIDDEN, 4), jnp.float32)
    b3 = jnp.array([[0.0, 0.0, -2.0, -2.0]], jnp.float32)

    # merged [bbox layer 1 | class_embed] weight/bias (heads shared over levels)
    wm = jnp.concatenate([w1, class_w], axis=1)        # (D, D + C)
    bm = jnp.concatenate([b1, class_b], axis=1)        # (1, D + C)

    # input_proj: 1x1 conv (xavier_uniform, gain=1), bias 0; GroupNorm affine = (1, 0)
    limit = math.sqrt(6.0 / (C_IN + HIDDEN))
    conv_w = jax.random.uniform(ks[5], (C_IN, HIDDEN), jnp.float32, -limit, limit)
    conv_b = jnp.zeros((1, HIDDEN), jnp.float32)
    gn_gamma = jnp.ones((1, HIDDEN), jnp.float32)
    gn_beta = jnp.zeros((1, HIDDEN), jnp.float32)

    # group membership matrix for GroupNorm pooling (only needed if GROUP_SIZE > 1)
    gids = jnp.arange(HIDDEN) // max(GROUP_SIZE, 1)
    group_mat = (gids[:, None] == gids[None, :]).astype(jnp.float32)

    # query_embed weights exist in the module but only feed the (simulated) transformer
    query_embed = jax.random.normal(ks[6], (NUM_QUERIES, 2 * HIDDEN), jnp.float32)

    return dict(
        # bf16 operands for the MXU (f32 accumulation inside the kernel)
        conv_w=conv_w.astype(jnp.bfloat16),
        wm=wm.astype(jnp.bfloat16),
        w2=w2.astype(jnp.bfloat16),
        w3=w3.astype(jnp.bfloat16),
        # f32 biases / affine params / stats helpers
        conv_b=conv_b, gn_gamma=gn_gamma, gn_beta=gn_beta, group_mat=group_mat,
        bm=bm, b2=b2, b3=b3,
        query_embed=query_embed,
    )


def deformable_detr_forward(params, feat, hs, init_reference, inter_references):
    L = hs.shape[0]

    # references per decoder level: lvl 0 -> init_reference, else inter_references[lvl-1]
    refs = jnp.concatenate([init_reference[None], inter_references[:L - 1]], axis=0)
    refs_flat = refs.reshape(L * B * NUM_QUERIES, 2)
    # pad to 4 lanes with 0.5 so inverse_sigmoid of the padding is exactly 0
    refs_pad = jnp.concatenate(
        [refs_flat, jnp.full((L * B * NUM_QUERIES, 2), 0.5, jnp.float32)], axis=-1)

    hs_flat = hs.reshape(L * B * NUM_QUERIES, HIDDEN).astype(jnp.bfloat16)
    feat_bf = feat.astype(jnp.bfloat16)

    srcs, head_packed = fused_detr_heads(feat_bf, hs_flat, refs_pad, params)

    outputs_class = head_packed[:, :NUM_CLASSES].reshape(L, B, NUM_QUERIES, NUM_CLASSES)
    outputs_coord = head_packed[:, NUM_CLASSES:].reshape(L, B, NUM_QUERIES, 4)

    out = {
        "pred_logits": outputs_class[-1],
        "pred_boxes": outputs_coord[-1],
        "pen_features": hs[-1],
        "aux_outputs": [
            {"pred_logits": outputs_class[i], "pred_boxes": outputs_coord[i]}
            for i in range(L - 1)
        ],
        "srcs": srcs,   # projected backbone features (would feed the transformer)
    }
    return out


if __name__ == "__main__":
    key = jax.random.PRNGKey(0)
    k_param, k_feat, k_hs, k_r0, k_ri = jax.random.split(key, 5)

    params = make_params(k_param)

    # simulated backbone feature map (channels-last, flattened spatial)
    feat = jax.random.normal(k_feat, (B, HW, C_IN), jnp.float32)

    # simulated deformable-transformer outputs
    hs = jax.random.normal(k_hs, (NUM_DEC_LAYERS, B, NUM_QUERIES, HIDDEN), jnp.float32)
    init_reference = jax.random.uniform(k_r0, (B, NUM_QUERIES, 2), jnp.float32)
    inter_references = jax.random.uniform(
        k_ri, (NUM_DEC_LAYERS - 1, B, NUM_QUERIES, 2), jnp.float32)

    out = deformable_detr_forward(params, feat, hs, init_reference, inter_references)

    jax.block_until_ready(out["srcs"])
    jax.block_until_ready(out["pred_logits"])
    jax.block_until_ready(out["pred_boxes"])

    assert out["pred_logits"].shape == (B, NUM_QUERIES, NUM_CLASSES)
    assert out["pred_boxes"].shape == (B, NUM_QUERIES, 4)
    assert len(out["aux_outputs"]) == NUM_DEC_LAYERS - 1
    assert out["srcs"].shape == (B, HW, HIDDEN)
    assert bool(jnp.all(jnp.isfinite(out["pred_boxes"])))
    assert bool(jnp.all((out["pred_boxes"] >= 0.0) & (out["pred_boxes"] <= 1.0)))

    print("KERNEL_OK")
</pallas_src>

<mosaic_0001>
module attributes {stable_mosaic.version = 11 : i64} {
  func.func @_fused_detr_kernel(%arg0: memref<2x256x4xbf16, #tpu.memory_space<vmem>>, %arg1: memref<96x32xbf16, #tpu.memory_space<vmem>>, %arg2: memref<96x4xf32, #tpu.memory_space<vmem>>, %arg3: memref<4x32xbf16, #tpu.memory_space<vmem>>, %arg4: memref<1x32xf32, #tpu.memory_space<vmem>>, %arg5: memref<1x32xf32, #tpu.memory_space<vmem>>, %arg6: memref<1x32xf32, #tpu.memory_space<vmem>>, %arg7: memref<32x40xbf16, #tpu.memory_space<vmem>>, %arg8: memref<1x40xf32, #tpu.memory_space<vmem>>, %arg9: memref<32x32xbf16, #tpu.memory_space<vmem>>, %arg10: memref<1x32xf32, #tpu.memory_space<vmem>>, %arg11: memref<32x4xbf16, #tpu.memory_space<vmem>>, %arg12: memref<1x4xf32, #tpu.memory_space<vmem>>, %arg13: memref<2x256x32xf32, #tpu.memory_space<vmem>>, %arg14: memref<96x12xf32, #tpu.memory_space<vmem>>) attributes {dimension_semantics = [], scalar_prefetch = 0 : i64, scratch_operands = 0 : i64, tpu.core_type = #tpu.core_type<tc>} {
    %c0 = arith.constant 0 : index
    %c0_0 = arith.constant 0 : index
    %c0_1 = arith.constant 0 : index
    %0 = vector.load %arg0[%c0, %c0_0, %c0_1] : memref<2x256x4xbf16, #tpu.memory_space<vmem>>, vector<2x256x4xbf16>
    %1 = vector.shape_cast %0 : vector<2x256x4xbf16> to vector<512x4xbf16>
    %c0_2 = arith.constant 0 : index
    %c0_3 = arith.constant 0 : index
    %2 = vector.load %arg3[%c0_2, %c0_3] : memref<4x32xbf16, #tpu.memory_space<vmem>>, vector<4x32xbf16>
    %cst = arith.constant dense<0.000000e+00> : vector<512x32xf32>
    %3 = tpu.matmul %1, %2, %cst {dimension_numbers = #tpu.dot_dimension_numbers<[1], [0], [0], [1], [0, 0, 1, 1], [], []>} : vector<512x4xbf16>, vector<4x32xbf16>, vector<512x32xf32> -> vector<512x32xf32>
    %c0_4 = arith.constant 0 : index
    %c0_5 = arith.constant 0 : index
    %4 = vector.load %arg4[%c0_4, %c0_5] : memref<1x32xf32, #tpu.memory_space<vmem>>, vector<1x32xf32>
    %5 = vector.broadcast %4 : vector<1x32xf32> to vector<512x32xf32>
    %6 = arith.addf %3, %5 : vector<512x32xf32>
    %7 = vector.shape_cast %6 : vector<512x32xf32> to vector<2x256x32xf32>
    %cst_6 = arith.constant dense<0.000000e+00> : vector<2x32xf32>
    %8 = vector.multi_reduction <add>, %7, %cst_6 [1] : vector<2x256x32xf32> to vector<2x32xf32>
    %9 = arith.mulf %7, %7 : vector<2x256x32xf32>
    %cst_7 = arith.constant dense<0.000000e+00> : vector<2x32xf32>
    %10 = vector.multi_reduction <add>, %9, %cst_7 [1] : vector<2x256x32xf32> to vector<2x32xf32>
    %cst_8 = arith.constant 3.906250e-03 : f32
    %11 = vector.broadcast %cst_8 : f32 to vector<2x32xf32>
    %12 = arith.mulf %8, %11 : vector<2x32xf32>
    %cst_9 = arith.constant 3.906250e-03 : f32
    %13 = vector.broadcast %cst_9 : f32 to vector<2x32xf32>
    %14 = arith.mulf %10, %13 : vector<2x32xf32>
    %15 = arith.mulf %12, %12 : vector<2x32xf32>
    %16 = arith.subf %14, %15 : vector<2x32xf32>
    %cst_10 = arith.constant 0.000000e+00 : f32
    %17 = vector.broadcast %cst_10 : f32 to vector<2x32xf32>
    %18 = arith.maximumf %16, %17 : vector<2x32xf32>
    %cst_11 = arith.constant 9.99999974E-6 : f32
    %19 = vector.broadcast %cst_11 : f32 to vector<2x32xf32>
    %20 = arith.addf %18, %19 : vector<2x32xf32>
    %21 = math.rsqrt %20 : vector<2x32xf32>
    %22 = vector.shape_cast %12 : vector<2x32xf32> to vector<2x1x32xf32>
    %23 = vector.broadcast %22 : vector<2x1x32xf32> to vector<2x256x32xf32>
    %24 = arith.subf %7, %23 : vector<2x256x32xf32>
    %25 = vector.shape_cast %21 : vector<2x32xf32> to vector<2x1x32xf32>
    %26 = vector.broadcast %25 : vector<2x1x32xf32> to vector<2x256x32xf32>
    %27 = arith.mulf %24, %26 : vector<2x256x32xf32>
    %c0_12 = arith.constant 0 : index
    %c0_13 = arith.constant 0 : index
    %28 = vector.load %arg5[%c0_12, %c0_13] : memref<1x32xf32, #tpu.memory_space<vmem>>, vector<1x32xf32>
    %29 = vector.shape_cast %28 : vector<1x32xf32> to vector<1x1x32xf32>
    %30 = vector.broadcast %29 : vector<1x1x32xf32> to vector<2x256x32xf32>
    %31 = arith.mulf %27, %30 : vector<2x256x32xf32>
    %c0_14 = arith.constant 0 : index
    %c0_15 = arith.constant 0 : index
    %32 = vector.load %arg6[%c0_14, %c0_15] : memref<1x32xf32, #tpu.memory_space<vmem>>, vector<1x32xf32>
    %33 = vector.shape_cast %32 : vector<1x32xf32> to vector<1x1x32xf32>
    %34 = vector.broadcast %33 : vector<1x1x32xf32> to vector<2x256x32xf32>
    %35 = arith.addf %31, %34 : vector<2x256x32xf32>
    %c0_16 = arith.constant 0 : index
    %c0_17 = arith.constant 0 : index
    %c0_18 = arith.constant 0 : index
    %36 = vector.load %arg13[%c0_16, %c0_17, %c0_18] : memref<2x256x32xf32, #tpu.memory_space<vmem>>, vector<2x256x32xf32>
    tpu.vector_store %arg13[%c0_16, %c0_17, %c0_18], %35 {strides = array<i32>} : memref<2x256x32xf32, #tpu.memory_space<vmem>>, vector<2x256x32xf32>,
    %c0_19 = arith.constant 0 : index
    %c0_20 = arith.constant 0 : index
    %37 = vector.load %arg1[%c0_19, %c0_20] : memref<96x32xbf16, #tpu.memory_space<vmem>>, vector<96x32xbf16>
    %c0_21 = arith.constant 0 : index
    %c0_22 = arith.constant 0 : index
    %38 = vector.load %arg7[%c0_21, %c0_22] : memref<32x40xbf16, #tpu.memory_space<vmem>>, vector<32x40xbf16>
    %cst_23 = arith.constant dense<0.000000e+00> : vector<96x40xf32>
    %39 = tpu.matmul %37, %38, %cst_23 {dimension_numbers = #tpu.dot_dimension_numbers<[1], [0], [0], [1], [0, 0, 1, 1], [], []>} : vector<96x32xbf16>, vector<32x40xbf16>, vector<96x40xf32> -> vector<96x40xf32>
    %c0_24 = arith.constant 0 : index
    %c0_25 = arith.constant 0 : index
    %40 = vector.load %arg8[%c0_24, %c0_25] : memref<1x40xf32, #tpu.memory_space<vmem>>, vector<1x40xf32>
    %41 = vector.broadcast %40 : vector<1x40xf32> to vector<96x40xf32>
    %42 = arith.addf %39, %41 : vector<96x40xf32>
    %43 = vector.extract_strided_slice %42 {offsets = [0, 0], sizes = [96, 32], strides = [1, 1]} : vector<96x40xf32> to vector<96x32xf32>
    %cst_26 = arith.constant 0.000000e+00 : f32
    %44 = vector.broadcast %cst_26 : f32 to vector<96x32xf32>
    %45 = arith.maximumf %43, %44 : vector<96x32xf32>
    %46 = vector.extract_strided_slice %42 {offsets = [0, 32], sizes = [96, 8], strides = [1, 1]} : vector<96x40xf32> to vector<96x8xf32>
    %47 = arith.truncf %45 : vector<96x32xf32> to vector<96x32xbf16>
    %c0_27 = arith.constant 0 : index
    %c0_28 = arith.constant 0 : index
    %48 = vector.load %arg9[%c0_27, %c0_28] : memref<32x32xbf16, #tpu.memory_space<vmem>>, vector<32x32xbf16>
    %cst_29 = arith.constant dense<0.000000e+00> : vector<96x32xf32>
    %49 = tpu.matmul %47, %48, %cst_29 {dimension_numbers = #tpu.dot_dimension_numbers<[1], [0], [0], [1], [0, 0, 1, 1], [], []>} : vector<96x32xbf16>, vector<32x32xbf16>, vector<96x32xf32> -> vector<96x32xf32>
    %c0_30 = arith.constant 0 : index
    %c0_31 = arith.constant 0 : index
    %50 = vector.load %arg10[%c0_30, %c0_31] : memref<1x32xf32, #tpu.memory_space<vmem>>, vector<1x32xf32>
    %51 = vector.broadcast %50 : vector<1x32xf32> to vector<96x32xf32>
    %52 = arith.addf %49, %51 : vector<96x32xf32>
    %cst_32 = arith.constant 0.000000e+00 : f32
    %53 = vector.broadcast %cst_32 : f32 to vector<96x32xf32>
    %54 = arith.maximumf %52, %53 : vector<96x32xf32>
    %55 = arith.truncf %54 : vector<96x32xf32> to vector<96x32xbf16>
    %c0_33 = arith.constant 0 : index
    %c0_34 = arith.constant 0 : index
    %56 = vector.load %arg11[%c0_33, %c0_34] : memref<32x4xbf16, #tpu.memory_space<vmem>>, vector<32x4xbf16>
    %cst_35 = arith.constant dense<0.000000e+00> : vector<96x4xf32>
    %57 = tpu.matmul %55, %56, %cst_35 {dimension_numbers = #tpu.dot_dimension_numbers<[1], [0], [0], [1], [0, 0, 1, 1], [], []>} : vector<96x32xbf16>, vector<32x4xbf16>, vector<96x4xf32> -> vector<96x4xf32>
    %c0_36 = arith.constant 0 : index
    %c0_37 = arith.constant 0 : index
    %58 = vector.load %arg12[%c0_36, %c0_37] : memref<1x4xf32, #tpu.memory_space<vmem>>, vector<1x4xf32>
    %59 = vector.broadcast %58 : vector<1x4xf32> to vector<96x4xf32>
    %60 = arith.addf %57, %59 : vector<96x4xf32>
    %c0_38 = arith.constant 0 : index
    %c0_39 = arith.constant 0 : index
    %61 = vector.load %arg2[%c0_38, %c0_39] : memref<96x4xf32, #tpu.memory_space<vmem>>, vector<96x4xf32>
    %cst_40 = arith.constant 0.000000e+00 : f32
    %cst_41 = arith.constant 1.000000e+00 : f32
    %62 = vector.broadcast %cst_40 : f32 to vector<96x4xf32>
    %63 = arith.maximumf %62, %61 : vector<96x4xf32>
    %64 = vector.broadcast %cst_41 : f32 to vector<96x4xf32>
    %65 = arith.minimumf %64, %63 : vector<96x4xf32>
    %cst_42 = arith.constant 9.99999974E-6 : f32
    %66 = vector.broadcast %cst_42 : f32 to vector<96x4xf32>
    %67 = arith.maximumf %65, %66 : vector<96x4xf32>
    %cst_43 = arith.constant 1.000000e+00 : f32
    %68 = vector.broadcast %cst_43 : f32 to vector<96x4xf32>
    %69 = arith.subf %68, %65 : vector<96x4xf32>
    %cst_44 = arith.constant 9.99999974E-6 : f32
    %70 = vector.broadcast %cst_44 : f32 to vector<96x4xf32>
    %71 = arith.maximumf %69, %70 : vector<96x4xf32>
    %72 = arith.divf %67, %71 : vector<96x4xf32>
    %73 = math.log %72 : vector<96x4xf32>
    %74 = arith.addf %60, %73 : vector<96x4xf32>
    %75 = arith.negf %74 : vector<96x4xf32>
    %76 = math.exp %75 : vector<96x4xf32>
    %cst_45 = arith.constant 1.000000e+00 : f32
    %77 = vector.broadcast %cst_45 : f32 to vector<96x4xf32>
    %78 = arith.addf %77, %76 : vector<96x4xf32>
    %79 = arith.divf %77, %78 : vector<96x4xf32>
    %80 = tpu.concatenate %46, %79 in 1 : vector<96x8xf32>, vector<96x4xf32> -> vector<96x12xf32>
    %c0_46 = arith.constant 0 : index
    %c0_47 = arith.constant 0 : index
    %81 = vector.load %arg14[%c0_46, %c0_47] : memref<96x12xf32, #tpu.memory_space<vmem>>, vector<96x12xf32>
    tpu.vector_store %arg14[%c0_46, %c0_47], %80 {strides = array<i32>} : memref<96x12xf32, #tpu.memory_space<vmem>>, vector<96x12xf32>,
    return
  }
}

</mosaic_0001>

<bundles_post_ra>
// kernel: tpu_custom_call.1
= control target key start
LH: loop header
LB: loop body
LE: loop exit
PB: predicated region body
PF: predicated region fallthrough
CT: control target
= control target key end

     0   :  { %vm373_vm0 = vcmask 1041408   ;;  %vm276_vm1 = vcmask 31744   ;;  %vm546_vm2 = vcmask 261120   ;;  %s2595_s26 = smov 96   ;;  %s2596_s28 = smov 8   ;;  %s4661_s3 = inlined_call_operand.vmem [shape: bf16[4,32], index: 3, kind: input, shape index: {}]   ;;  %s4662_s0 = inlined_call_operand.vmem [shape: bf16[2,256,4], index: 0, kind: input, shape index: {}]   ;;  %s4663_s7 = inlined_call_operand.vmem [shape: bf16[32,40], index: 7, kind: input, shape index: {}]   ;;  %s4664_s4 = inlined_call_operand.vmem [shape: f32[1,32], index: 4, kind: input, shape index: {}]   ;;  %s4665_s1 = inlined_call_operand.vmem [shape: bf16[96,32], index: 1, kind: input, shape index: {}]   ;;  %s4666_s8 = inlined_call_operand.vmem [shape: f32[1,40], index: 8, kind: input, shape index: {}]   ;;  %s4667_s5 = inlined_call_operand.vmem [shape: f32[1,32], index: 5, kind: input, shape index: {}]   ;;  %s4668_s6 = inlined_call_operand.vmem [shape: f32[1,32], index: 6, kind: input, shape index: {}]   ;;  %s4669_s9 = inlined_call_operand.vmem [shape: bf16[32,32], index: 9, kind: input, shape index: {}]   ;;  %s4670_s11 = inlined_call_operand.vmem [shape: bf16[32,4], index: 11, kind: input, shape index: {}]   ;;  %s4671_s10 = inlined_call_operand.vmem [shape: f32[1,32], index: 10, kind: input, shape index: {}]   ;;  %s4672_s13 = inlined_call_operand.vmem [shape: f32[2,256,32], index: 13, kind: output, shape index: {0}]   ;;  %s4673_s12 = inlined_call_operand.vmem [shape: f32[1,4], index: 12, kind: input, shape index: {}]   ;;  %s4674_s2 = inlined_call_operand.vmem [shape: f32[96,4], index: 2, kind: input, shape index: {}]   ;;  %s4675_s14 = inlined_call_operand.vmem [shape: f32[96,12], index: 14, kind: output, shape index: {1}]  }
   0x1   :  { %v111_v0 = vld [vmem:[%s4661_s3] sm:$0x3]  ;;  %v2453_v3 = vld [vmem:[%s4662_s0 + $0x68] sm:$0xff]  ;;  %v2454_v7 = vld [vmem:[%s4662_s0 + $0x70] sm:$0xff] }
   0x2   :  { %v375_v1 = vsel %vm373_vm0, %v111_v0, 0  ;;  %v2440_v2 = vld [vmem:[%s4662_s0] sm:$0xff]  ;;  %v2479_v4 = vld [vmem:[%s4663_s7 + $0x8] sm:$0xff]  ;;  %v2442_v10 = vld [vmem:[%s4662_s0 + $0x10] sm:$0xff] }
   0x3   :  { %384 = vmatpush.bf16.msra.mxu0 %v375_v1  ;;  %2484 = vmatpush.bf16.msra.mxu1 %v375_v1  ;;  %v2460_v5 = vld [vmem:[%s4662_s0 + $0xa0] sm:$0xff]  ;;  %v2441_v6 = vld [vmem:[%s4662_s0 + $0x8] sm:$0xff]  ;;  %v2455_v11 = vld [vmem:[%s4662_s0 + $0x78] sm:$0xff] }
   0x4   :  { %2485 = vmatpush.bf16.msra.mxu2 %v375_v1  ;;  %v2461_v8 = vld [vmem:[%s4662_s0 + $0xa8] sm:$0xff]  ;;  %v2478_v9 = vld [vmem:[%s4663_s7] sm:$0xff]  ;;  %v2462_v12 = vld [vmem:[%s4662_s0 + $0xb0] sm:$0xff] }
   0x5   :  { %v2443_v13 = vld [vmem:[%s4662_s0 + $0x18] sm:$0xff]  ;;  %v2456_v14 = vld [vmem:[%s4662_s0 + $0x80] sm:$0xff]  ;;  %v2457_v17 = vld [vmem:[%s4662_s0 + $0x88] sm:$0xff] }
   0x6   :  { %2330 = vmatmul.msk.bf16.vlgmr.msra.gmra.mxu0 %vm276_vm1, %v2440_v2  ;;  %2343 = vmatmul.msk.bf16.vlgmr.msra.gmra.mxu1 %vm276_vm1, %v2453_v3  ;;  %v2463_v15 = vld [vmem:[%s4662_s0 + $0xb8] sm:$0xff]  ;;  %v2444_v16 = vld [vmem:[%s4662_s0 + $0x20] sm:$0xff]  ;;  %v2445_v19 = vld [vmem:[%s4662_s0 + $0x28] sm:$0xff] }
   0x7   :  { %1333 = vmatpush.bf16.msrb.mxu1 %v2479_v4  ;;  %2350 = vmatmul.msk.bf16.vlgmr.msra.gmra.mxu2 %vm276_vm1, %v2460_v5  ;;  %v2464_v18 = vld [vmem:[%s4662_s0 + $0xc0] sm:$0xff]  ;;  %v2458_v20 = vld [vmem:[%s4662_s0 + $0x90] sm:$0xff]  ;;  %v2465_v21 = vld [vmem:[%s4662_s0 + $0xc8] sm:$0xff] }
   0x8   :  { %v2446_v22 = vld [vmem:[%s4662_s0 + $0x30] sm:$0xff]  ;;  %v2459_v23 = vld [vmem:[%s4662_s0 + $0x98] sm:$0xff]  ;;  %v2472_v26 = vld [vmem:[%s4665_s1] sm:$0xff] }
   0x9   :  { %v2466_v24 = vld [vmem:[%s4662_s0 + $0xd0] sm:$0xff]  ;;  %v2447_v25 = vld [vmem:[%s4662_s0 + $0x38] sm:$0xff]  ;;  %v2448_v28 = vld [vmem:[%s4662_s0 + $0x40] sm:$0xff] }
   0xa   :  { %v2467_v27 = vld [vmem:[%s4662_s0 + $0xd8] sm:$0xff]  ;;  %v2473_v29 = vld [vmem:[%s4665_s1 + $0x8] sm:$0xff]  ;;  %v2468_v32 = vld [vmem:[%s4662_s0 + $0xe0] sm:$0xff] }
   0xb   :  { %1334 = vmatpush.bf16.msrb.mxu1 %v2478_v9  ;;  %v2449_v37 = vld [vmem:[%s4662_s0 + $0x48] sm:$0xff]  ;;  %v2474_v38 = vld [vmem:[%s4665_s1 + $0x10] sm:$0xff]  ;;  %v2475_v47 = vld [vmem:[%s4665_s1 + $0x18] sm:$0xff] }
   0xc   :  { %v2469_v41 = vld [vmem:[%s4662_s0 + $0xe8] sm:$0xff]  ;;  %v2450_v46 = vld [vmem:[%s4662_s0 + $0x50] sm:$0xff]  ;;  %v2451_v55 = vld [vmem:[%s4662_s0 + $0x58] sm:$0xff] }
   0xd   :  { %v2470_v50 = vld [vmem:[%s4662_s0 + $0xf0] sm:$0xff]  ;;  %v2476_v56 = vld [vmem:[%s4665_s1 + $0x20] sm:$0xff]  ;;  %v2471_v59 = vld [vmem:[%s4662_s0 + $0xf8] sm:$0xff] }
   0xe   :  { %v2452_v63 = vld [vmem:[%s4662_s0 + $0x60] sm:$0xff]  ;;  %v2477_v1 = vld [vmem:[%s4665_s1 + $0x28] sm:$0xff] }
  0x16   :  { %2331 = vmatmul.msk.bf16.gmra.mxu0 %vm276_vm1, %v2441_v6  ;;  %2344 = vmatmul.msk.bf16.gmra.mxu1 %vm276_vm1, %v2454_v7 }
  0x17   :  { %2351 = vmatmul.msk.bf16.gmra.mxu2 %vm276_vm1, %v2461_v8 }
  0x26   :  { %2332 = vmatmul.msk.bf16.gmra.mxu0 %vm276_vm1, %v2442_v10  ;;  %2345 = vmatmul.msk.bf16.gmra.mxu1 %vm276_vm1, %v2455_v11  ;;  %v2481_v11 = vld [vmem:[%s4669_s9 + $0x8] sm:$0xff] }
  0x27   :  { %2352 = vmatmul.msk.bf16.gmra.mxu2 %vm276_vm1, %v2462_v12  ;;  %1428 = vmatpush.bf16.msra.mxu3 %v2481_v11 }
  0x36   :  { %2333 = vmatmul.msk.bf16.gmra.mxu0 %vm276_vm1, %v2443_v13  ;;  %2346 = vmatmul.msk.bf16.gmra.mxu1 %vm276_vm1, %v2456_v14  ;;  %v2897_v14 = vld [vmem:[%s4664_s4] ss:$0 sm:$0xff] }
  0x37   :  { %2353 = vmatmul.msk.bf16.gmra.mxu2 %vm276_vm1, %v2463_v15  ;;  %v2480_v15 = vld [vmem:[%s4669_s9] sm:$0xff] }
  0x38   :  { %1429 = vmatpush.bf16.msra.mxu3 %v2480_v15 }
  0x46   :  { %2334 = vmatmul.msk.bf16.gmra.mxu0 %vm276_vm1, %v2444_v16  ;;  %2347 = vmatmul.msk.bf16.gmra.mxu1 %vm276_vm1, %v2457_v17 }
  0x47   :  { %2354 = vmatmul.msk.bf16.gmra.mxu2 %vm276_vm1, %v2464_v18 }
  0x56   :  { %2335 = vmatmul.msk.bf16.gmra.mxu0 %vm276_vm1, %v2445_v19  ;;  %2348 = vmatmul.msk.bf16.gmra.mxu1 %vm276_vm1, %v2458_v20 }
  0x57   :  { %2355 = vmatmul.msk.bf16.gmra.mxu2 %vm276_vm1, %v2465_v21 }
  0x66   :  { %2336 = vmatmul.msk.bf16.gmra.mxu0 %vm276_vm1, %v2446_v22  ;;  %2349 = vmatmul.msk.bf16.gmra.mxu1 %vm276_vm1, %v2459_v23 }
  0x67   :  { %2356 = vmatmul.msk.bf16.gmra.mxu2 %vm276_vm1, %v2466_v24 }
  0x76   :  { %2337 = vmatmul.msk.bf16.gmra.mxu0 %vm276_vm1, %v2447_v25  ;;  %2394 = vmatmul.msk.bf16.vlgmr.msrb.gmra.mxu1 %vm546_vm2, %v2472_v26 }
  0x77   :  { %2357 = vmatmul.msk.bf16.gmra.mxu2 %vm276_vm1, %v2467_v27 }
  0x83   :  { %v2783_v30 = vpop.f32.mrf.mxu0  ;;  %v2785_v31 = vpop.f32.mrf.mxu1 }
  0x86   :  { %2338 = vmatmul.msk.bf16.gmra.mxu0 %vm276_vm1, %v2448_v28  ;;  %2395 = vmatmul.msk.bf16.gmra.mxu1 %vm546_vm2, %v2473_v29 }
  0x87   :  { %2358 = vmatmul.msk.bf16.gmra.mxu2 %vm276_vm1, %v2468_v32 }
  0x8a   :  { %v2793_v33 = vpop.f32.mrf.mxu2 }
  0x8b   :  { %v2795_v34 = vpop.f32.mrf.mxu0  ;;  %v2797_v35 = vpop.f32.mrf.mxu1 }
  0x92   :  { %v2799_v36 = vpop.f32.mrf.mxu2 }
  0x93   :  { %v2807_v39 = vpop.f32.mrf.mxu0  ;;  %v2809_v40 = vpop.f32.mrf.mxu1 }
  0x96   :  { %2339 = vmatmul.msk.bf16.gmra.mxu0 %vm276_vm1, %v2449_v37  ;;  %2396 = vmatmul.msk.bf16.gmra.mxu1 %vm546_vm2, %v2474_v38 }
  0x97   :  { %2359 = vmatmul.msk.bf16.gmra.mxu2 %vm276_vm1, %v2469_v41 }
  0x9a   :  { %v2817_v42 = vpop.f32.mrf.mxu2 }
  0x9b   :  { %v2819_v43 = vpop.f32.mrf.mxu0  ;;  %v2821_v44 = vpop.f32.mrf.mxu1 }
  0xa2   :  { %v2823_v45 = vpop.f32.mrf.mxu2 }
  0xa3   :  { %v2831_v48 = vpop.f32.mrf.mxu0  ;;  %v2833_v49 = vpop.f32.mrf.mxu1 }
  0xa6   :  { %2340 = vmatmul.msk.bf16.gmra.mxu0 %vm276_vm1, %v2450_v46  ;;  %2397 = vmatmul.msk.bf16.gmra.mxu1 %vm546_vm2, %v2475_v47 }
  0xa7   :  { %2360 = vmatmul.msk.bf16.gmra.mxu2 %vm276_vm1, %v2470_v50 }
  0xaa   :  { %v2841_v51 = vpop.f32.mrf.mxu2 }
  0xab   :  { %v2843_v52 = vpop.f32.mrf.mxu0  ;;  %v2845_v53 = vpop.f32.mrf.mxu1 }
  0xb2   :  { %v2847_v54 = vpop.f32.mrf.mxu2 }
  0xb3   :  { %v2855_v57 = vpop.f32.mrf.mxu0  ;;  %v466_v58 = vpop.f32.mrf.mxu1 }
  0xb4   :  { %v2906_v17 = vadd.f32 %v2897_v14, %v466_v58 }
  0xb6   :  { %2341 = vmatmul.msk.bf16.gmra.mxu0 %vm276_vm1, %v2451_v55  ;;  %2398 = vmatmul.msk.bf16.gmra.mxu1 %vm546_vm2, %v2476_v56  ;;  %v717_v24 = vmul.f32 %v2906_v17, %v2906_v17  ;;  %v616_v28 = vsel %vm546_vm2, %v2906_v17, 0.0 }
  0xb7   :  { %2361 = vmatmul.msk.bf16.gmra.mxu2 %vm276_vm1, %v2471_v59 }
  0xb8   :  { %v818_v41 = vsel %vm546_vm2, %v717_v24, 0.0 }
  0xba   :  { %v2863_v60 = vpop.f32.mrf.mxu2 }
  0xbb   :  { %v2865_v61 = vpop.f32.mrf.mxu0  ;;  %v468_v62 = vpop.f32.mrf.mxu1 }
  0xbc   :  { %v2903_v16 = vadd.f32 %v2897_v14, %v468_v62 }
  0xbe   :  { %v718_v20 = vmul.f32 %v2903_v16, %v2903_v16  ;;  %v617_v25 = vsel %vm546_vm2, %v2903_v16, 0.0 }
  0xbf   :  { %v618_v46 = vadd.f32 %v617_v25, %v616_v28  ;;  %v2967_v28 = vadd.f32 %v2897_v14, %v2793_v33 }
  0xc0   :  { %v819_v29 = vsel %vm546_vm2, %v718_v20, 0.0 }
  0xc1   :  { %v820_v58 = vadd.f32 %v819_v29, %v818_v41 }
  0xc2   :  { %v2870_v0 = vpop.f32.mrf.mxu2 }
  0xc3   :  { %v2875_v2 = vpop.f32.mrf.mxu0  ;;  %v471_v3 = vpop.f32.mrf.mxu1 }
  0xc4   :  { %v2909_v18 = vadd.f32 %v2897_v14, %v471_v3 }
  0xc6   :  { %2342 = vmatmul.msk.bf16.gmra.mxu0 %vm276_vm1, %v2452_v63  ;;  %2399 = vmatmul.msk.bf16.gmra.mxu1 %vm546_vm2, %v2477_v1  ;;  %v719_v26 = vmul.f32 %v2909_v18, %v2909_v18  ;;  %v619_v32 = vsel %vm546_vm2, %v2909_v18, 0.0 }
  0xc7   :  { %v620_v59 = vadd.f32 %v619_v32, %v618_v46 }
  0xc8   :  { %v821_v47 = vsel %vm546_vm2, %v719_v26, 0.0 }
  0xca   :  { %v2879_v4 = vpop.f32.mrf.mxu2 }
  0xcb   :  { %v2881_v5 = vpop.f32.mrf.mxu0  ;;  %v473_v6 = vpop.f32.mrf.mxu1 }
  0xcc   :  { %v2916_v21 = vadd.f32 %v2897_v14, %v473_v6 }
  0xce   :  { %v720_v37 = vmul.f32 %v2916_v21, %v2916_v21  ;;  %v621_v50 = vsel %vm546_vm2, %v2916_v21, 0.0 }
  0xcf   :  { %v622_v11 = vadd.f32 %v621_v50, %v620_v59 }
  0xd0   :  { %v823_v63 = vsel %vm546_vm2, %v720_v37, 0.0 }
  0xd2   :  { %v2883_v7 = vpop.f32.mrf.mxu2 }
  0xd3   :  { %v2885_v8 = vpop.f32.mrf.mxu0  ;;  %v476_v9 = vpop.f32.mrf.mxu1 }
  0xd4   :  { %v2927_v27 = vadd.f32 %v2897_v14, %v476_v9  ;;  %v822_v9 = vadd.f32 %v821_v47, %v820_v58  ;;  %v2977_v47 = vld [vmem:[%s4666_s8] ss:$0 sm:$0xff] }
  0xd6   :  { %v721_v55 = vmul.f32 %v2927_v27, %v2927_v27  ;;  %v623_v1 = vsel %vm546_vm2, %v2927_v27, 0.0  ;;  %v824_v25 = vadd.f32 %v823_v63, %v822_v9  ;;  %v725_v63 = vmul.f32 %v2967_v28, %v2967_v28 }
  0xd7   :  { %v624_v26 = vadd.f32 %v623_v1, %v622_v11  ;;  %v2988_v1 = vadd.f32 %v2897_v14, %v2799_v36 }
  0xd8   :  { %v825_v20 = vsel %vm546_vm2, %v721_v55, 0.0 }
  0xd9   :  { %v826_v41 = vadd.f32 %v825_v20, %v824_v25  ;;  %v726_v36 = vmul.f32 %v2988_v1, %v2988_v1 }
  0xda   :  { %v2887_v10 = vpop.f32.mrf.mxu2 }
  0xdb   :  { %v2892_v12 = vpop.f32.mrf.mxu0  ;;  %v478_v13 = vpop.f32.mrf.mxu1 }
  0xdc   :  { %v2937_v38 = vadd.f32 %v2897_v14, %v478_v13 }
  0xde   :  { %v722_v3 = vmul.f32 %v2937_v38, %v2937_v38 }
  0xe0   :  { %v827_v29 = vsel %vm546_vm2, %v722_v3, 0.0 }
  0xe1   :  { %v828_v55 = vadd.f32 %v827_v29, %v826_v41  ;;  %v3002_v29 = vadd.f32 %v2897_v14, %v2817_v42  ;;  %v3017_v42 = vadd.f32 %v2897_v14, %v2823_v45 }
  0xe2   :  { %v2911_v19 = vpop.f32.mrf.mxu2 }
  0xe3   :  { %v2918_v22 = vpop.f32.mrf.mxu0  ;;  %v481_v23 = vpop.f32.mrf.mxu1  ;;  %4715 = vst [vmem:[#allocation3_spill] sm:$0xff] %v3017_v42 }
  0xe4   :  { %v2946_v56 = vadd.f32 %v2897_v14, %v481_v23  ;;  %v625_v23 = vsel %vm546_vm2, %v2937_v38, 0.0 }
  0xe5   :  { %v626_v46 = vadd.f32 %v625_v23, %v624_v26  ;;  %v631_v23 = vsel %vm546_vm2, %v2967_v28, 0.0  ;;  %v833_v26 = vsel %vm546_vm2, %v725_v63, 0.0 }
  0xe6   :  { %v723_v24 = vmul.f32 %v2946_v56, %v2946_v56  ;;  %v627_v32 = vsel %vm546_vm2, %v2946_v56, 0.0 }
  0xe7   :  { %v628_v58 = vadd.f32 %v627_v32, %v626_v46 }
  0xe8   :  { %v829_v50 = vsel %vm546_vm2, %v723_v24, 0.0 }
  0xe9   :  { %v830_v9 = vadd.f32 %v829_v50, %v828_v55  ;;  %v3010_v50 = vadd.f32 %v2897_v14, %v2783_v30  ;;  %v727_v55 = vmul.f32 %v3002_v29, %v3002_v29  ;;  %v635_v30 = vsel %vm546_vm2, %v3002_v29, 0.0 }
  0xea   :  { %v2948_v62 = vpop.f32.mrf.mxu2 }
  0xeb   :  { %v483_v6 = vpop.f32.mrf.mxu1  ;;  %v2955_v13 = vpop.f32.mrf.mxu0  ;;  %4714 = vst [vmem:[#allocation2_spill] sm:$0xff] %v3010_v50  ;;  %v685_v45 = vmul.f32 %v3010_v50, %v3010_v50 }
  0xec   :  { %v2958_v15 = vadd.f32 %v2897_v14, %v483_v6 }
  0xee   :  { %v724_v37 = vmul.f32 %v2958_v15, %v2958_v15  ;;  %v629_v33 = vsel %vm546_vm2, %v2958_v15, 0.0 }
  0xef   :  { %v630_v11 = vadd.f32 %v629_v33, %v628_v58  ;;  %v835_v33 = vsel %vm546_vm2, %v726_v36, 0.0  ;;  %v3038_v36 = vadd.f32 %v2897_v14, %v2807_v39  ;;  %v749_v39 = vsel %vm546_vm2, %v685_v45, 0.0 }
  0xf0   :  { %v831_v3 = vsel %vm546_vm2, %v724_v37, 0.0  ;;  %v633_v37 = vsel %vm546_vm2, %v2988_v1, 0.0 }
  0xf1   :  { %v832_v24 = vadd.f32 %v831_v3, %v830_v9  ;;  %v632_v32 = vadd.f32 %v631_v23, %v630_v11  ;;  %4718 = vst [vmem:[#allocation6_spill] sm:$0xff] %v3038_v36  ;;  %v550_v45 = vsel %vm546_vm2, %v3038_v36, 0.0 }
  0xf2   :  { %v2982_v59 = vpop.f32.mrf.mxu2 }
  0xf3   :  { %v1336_v6 = vpop.f32.mrf.mxu1  ;;  %v2994_v25 = vpop.f32.mrf.mxu0  ;;  %v834_v41 = vadd.f32 %v833_v26, %v832_v24  ;;  %v634_v63 = vadd.f32 %v633_v37, %v632_v32  ;;  %v837_v24 = vsel %vm546_vm2, %v727_v55, 0.0  ;;  %v728_v26 = vmul.f32 %v3017_v42, %v3017_v42 }
  0xf4   :  { %v1337_v20 = vadd.f32 %v2977_v47, %v1336_v6  ;;  %v3022_v6 = vadd.f32 %v2897_v14, %v2795_v34  ;;  %v3034_v34 = vadd.f32 %v2897_v14, %v2841_v51  ;;  %v637_v51 = vsel %vm546_vm2, %v3017_v42, 0.0 }
  0xf5   :  { %v836_v9 = vadd.f32 %v835_v33, %v834_v41  ;;  %v547_v41 = vsel %vm546_vm2, %v3010_v50, 0.0 }
  0xf6   :  { %2084 = vrot.lane.b32.xlu0 %v1337_v20, %s2595_s26  ;;  %4716 = vst [vmem:[#allocation4_spill] sm:$0xff] %v3022_v6  ;;  %v1366_v11 = vmax.f32 %v1337_v20, 0.0  ;;  %v636_v20 = vadd.f32 %v635_v30, %v634_v63  ;;  %v548_v33 = vsel %vm546_vm2, %v3022_v6, 0.0  ;;  %v686_v55 = vmul.f32 %v3022_v6, %v3022_v6 }
  0xf7   :  { %4717 = vst [vmem:[#allocation5_spill] sm:$0xff] %v3034_v34  ;;  %v839_v63 = vsel %vm546_vm2, %v728_v26, 0.0  ;;  %v729_v30 = vmul.f32 %v3034_v34, %v3034_v34  ;;  %v549_v6 = vadd.f32 %v548_v33, %v547_v41  ;;  %v3069_v26 = vadd.f32 %v2897_v14, %v2819_v43 }
  0xf8   :  { %v3079_v33 = vadd.f32 %v2897_v14, %v2863_v60 }
  0xf9   :  { %4720 = vst [vmem:[#allocation8_spill] sm:$0xff] %v3069_v26  ;;  %v841_v41 = vsel %vm546_vm2, %v729_v30, 0.0 }
  0xfa   :  { %v3006_v46 = vpop.f32.mrf.mxu2  ;;  %4721 = vst [vmem:[#allocation9_spill] sm:$0xff] %v3079_v33 }
  0xfb   :  { %v1338_v58 = vpop.f32.mrf.mxu1  ;;  %v3040_v32 = vpop.f32.mrf.mxu0 }
  0xfc   :  { %v1339_v3 = vadd.f32 %v2977_v47, %v1338_v58  ;;  %v838_v58 = vadd.f32 %v837_v24, %v836_v9  ;;  %v687_v9 = vmul.f32 %v3038_v36, %v3038_v36  ;;  %v638_v24 = vadd.f32 %v637_v51, %v636_v20 }
  0xfd   :  { %v551_v51 = vadd.f32 %v550_v45, %v549_v6  ;;  %v552_v36 = vsel %vm546_vm2, %v3069_v26, 0.0 }
  0xfe   :  { %v1367_v23 = vmax.f32 %v1339_v3, 0.0  ;;  %2086 = vrot.lane.b32.xlu0 %v1339_v3, %s2595_s26  ;;  %v840_v42 = vadd.f32 %v839_v63, %v838_v58  ;;  %v752_v43 = vsel %vm546_vm2, %v687_v9, 0.0  ;;  %v688_v58 = vmul.f32 %v3069_v26, %v3069_v26 }
  0xff   :  { %v3088_v63 = vadd.f32 %v2897_v14, %v2831_v48  ;;  %v731_v9 = vmul.f32 %v3079_v33, %v3079_v33  ;;  %v553_v45 = vadd.f32 %v552_v36, %v551_v51 }
 0x100   :  { %v1378_v37 = vpack.c.bf16 %v1367_v23, %v1366_v11  ;;  %v3059_v11 = vadd.f32 %v2897_v14, %v2847_v54  ;;  %v639_v54 = vsel %vm546_vm2, %v3034_v34, 0.0  ;;  %v842_v60 = vadd.f32 %v841_v41, %v840_v42 }
 0x101   :  { %4722 = vst [vmem:[#allocation10_spill] sm:$0xff] %v3088_v63  ;;  %v754_v42 = vsel %vm546_vm2, %v688_v58, 0.0  ;;  %v554_v41 = vsel %vm546_vm2, %v3088_v63, 0.0  ;;  %v3121_v58 = vadd.f32 %v2897_v14, %v2879_v4 }
 0x102   :  { %v3050_v3 = vpop.f32.mrf.mxu2  ;;  %2408 = vmatmul.msk.bf16.vlgmr.msra.gmra.mxu3 %vm546_vm2, %v1378_v37  ;;  %4719 = vst [vmem:[#allocation7_spill] sm:$0xff] %v3059_v11  ;;  %v750_v37 = vsel %vm546_vm2, %v686_v55, 0.0  ;;  %v730_v20 = vmul.f32 %v3059_v11, %v3059_v11  ;;  %v641_v30 = vsel %vm546_vm2, %v3059_v11, 0.0  ;;  %v643_v11 = vsel %vm546_vm2, %v3079_v33, 0.0 }
 0x103   :  { %v1341_v23 = vpop.f32.mrf.mxu1  ;;  %v751_v55 = vadd.f32 %v750_v37, %v749_v39  ;;  %v3092_v34 = vpop.f32.mrf.mxu0  ;;  %v555_v33 = vadd.f32 %v554_v41, %v553_v45  ;;  %v3142_v45 = vadd.f32 %v2897_v14, %v2883_v7 }
 0x104   :  { %v1342_v50 = vadd.f32 %v2977_v47, %v1341_v23  ;;  %v640_v23 = vadd.f32 %v639_v54, %v638_v24  ;;  %v843_v39 = vsel %vm546_vm2, %v730_v20, 0.0  ;;  %v3101_v24 = vadd.f32 %v2897_v14, %v2870_v0 }
 0x105   :  { %v753_v48 = vadd.f32 %v752_v43, %v751_v55  ;;  %v689_v20 = vmul.f32 %v3088_v63, %v3088_v63  ;;  %v3113_v0 = vadd.f32 %v2897_v14, %v2843_v52  ;;  %v844_v55 = vadd.f32 %v843_v39, %v842_v60 }
 0x106   :  { %2088 = vrot.lane.b32.xlu1 %v1342_v50, %s2595_s26  ;;  %v642_v54 = vadd.f32 %v641_v30, %v640_v23  ;;  %v1368_v36 = vmax.f32 %v1342_v50, 0.0  ;;  %v845_v43 = vsel %vm546_vm2, %v731_v9, 0.0  ;;  %v732_v23 = vmul.f32 %v3101_v24, %v3101_v24 }
 0x107   :  { %4723 = vst [vmem:[#allocation11_spill] sm:$0xff] %v3113_v0  ;;  %v755_v63 = vadd.f32 %v754_v42, %v753_v48  ;;  %v645_v52 = vsel %vm546_vm2, %v3101_v24, 0.0  ;;  %v756_v50 = vsel %vm546_vm2, %v689_v20, 0.0  ;;  %v3130_v60 = vadd.f32 %v2897_v14, %v2855_v57 }
 0x108   :  { %v644_v30 = vadd.f32 %v643_v11, %v642_v54  ;;  %v846_v39 = vadd.f32 %v845_v43, %v844_v55  ;;  %v556_v4 = vsel %vm546_vm2, %v3113_v0, 0.0  ;;  %v847_v11 = vsel %vm546_vm2, %v732_v23, 0.0 }
 0x109   :  { %4724 = vst [vmem:[#allocation12_spill] sm:$0xff] %v3130_v60  ;;  %v733_v48 = vmul.f32 %v3121_v58, %v3121_v58  ;;  %v757_v20 = vadd.f32 %v756_v50, %v755_v63  ;;  %v647_v55 = vsel %vm546_vm2, %v3121_v58, 0.0  ;;  %v558_v43 = vsel %vm546_vm2, %v3130_v60, 0.0 }
 0x10a   :  { %v3094_v6 = vpop.f32.mrf.mxu2  ;;  %v646_v57 = vadd.f32 %v645_v52, %v644_v30  ;;  %v848_v23 = vadd.f32 %v847_v11, %v846_v39  ;;  %v691_v7 = vmul.f32 %v3130_v60, %v3130_v60  ;;  %v734_v63 = vmul.f32 %v3142_v45, %v3142_v45 }
 0x10b   :  { %v1343_v37 = vpop.f32.mrf.mxu1  ;;  %v3144_v42 = vpop.f32.mrf.mxu0  ;;  %v849_v30 = vsel %vm546_vm2, %v733_v48, 0.0  ;;  %v649_v50 = vsel %vm546_vm2, %v3142_v45, 0.0 }
 0x10c   :  { %v1344_v26 = vadd.f32 %v2977_v47, %v1343_v37  ;;  %v648_v52 = vadd.f32 %v647_v55, %v646_v57  ;;  %v850_v11 = vadd.f32 %v849_v30, %v848_v23  ;;  %v3179_v57 = vadd.f32 %v2897_v14, %v2911_v19 }
 0x10d   :  { %v3188_v23 = vadd.f32 %v2897_v14, %v2875_v2  ;;  %v3200_v2 = vadd.f32 %v2897_v14, %v2948_v62 }
 0x10e   :  { %v1369_v51 = vmax.f32 %v1344_v26, 0.0  ;;  %2090 = vrot.lane.b32.xlu1 %v1344_v26, %s2595_s26  ;;  %v690_v26 = vmul.f32 %v3113_v0, %v3113_v0 }
 0x10f   :  { %4726 = vst [vmem:[#allocation14_spill] sm:$0xff] %v3188_v23 }
 0x110   :  { %v1379_v37 = vpack.c.bf16 %v1369_v51, %v1368_v36  ;;  %v557_v36 = vadd.f32 %v556_v4, %v555_v33  ;;  %v758_v51 = vsel %vm546_vm2, %v690_v26, 0.0  ;;  %v3164_v33 = vadd.f32 %v2897_v14, %v2865_v61  ;;  %v2483_v26 = vld [vmem:[%s4670_s11 + $0x8] sm:$0xff] }
 0x111   :  { %v759_v39 = vadd.f32 %v758_v51, %v757_v20  ;;  %1523 = vmatpush.bf16.msrb.mxu3 %v2483_v26  ;;  %v650_v51 = vadd.f32 %v649_v50, %v648_v52  ;;  %v736_v50 = vmul.f32 %v3179_v57, %v3179_v57 }
 0x112   :  { %v3132_v9 = vpop.f32.mrf.mxu2  ;;  %2409 = vmatmul.msk.bf16.gmra.mxu3 %vm546_vm2, %v1379_v37  ;;  %v3160_v37 = vadd.f32 %v2897_v14, %v2887_v10  ;;  %4725 = vst [vmem:[#allocation13_spill] sm:$0xff] %v3164_v33  ;;  %v559_v4 = vadd.f32 %v558_v43, %v557_v36  ;;  %v760_v10 = vsel %vm546_vm2, %v691_v7, 0.0  ;;  %v560_v20 = vsel %vm546_vm2, %v3164_v33, 0.0 }
 0x113   :  { %v1346_v54 = vpop.f32.mrf.mxu1  ;;  %v692_v36 = vmul.f32 %v3164_v33, %v3164_v33  ;;  %v761_v19 = vadd.f32 %v760_v10, %v759_v39  ;;  %v3205_v39 = vadd.f32 %v2897_v14, %v2881_v5  ;;  %v693_v10 = vmul.f32 %v3188_v23, %v3188_v23 }
 0x114   :  { %v1347_v41 = vadd.f32 %v2977_v47, %v1346_v54  ;;  %v851_v54 = vsel %vm546_vm2, %v734_v63, 0.0  ;;  %v735_v61 = vmul.f32 %v3160_v37, %v3160_v37  ;;  %v651_v7 = vsel %vm546_vm2, %v3160_v37, 0.0  ;;  %v3192_v63 = vpop.f32.mrf.mxu0 }
 0x115   :  { %v852_v30 = vadd.f32 %v851_v54, %v850_v11  ;;  %v561_v0 = vadd.f32 %v560_v20, %v559_v4  ;;  %4727 = vst [vmem:[#allocation15_spill] sm:$0xff] %v3205_v39  ;;  %v562_v4 = vsel %vm546_vm2, %v3188_v23, 0.0  ;;  %v653_v54 = vsel %vm546_vm2, %v3179_v57, 0.0 }
 0x116   :  { %2092 = vrot.lane.b32.xlu2 %v1347_v41, %s2595_s26  ;;  %v1370_v26 = vmax.f32 %v1347_v41, 0.0  ;;  %v853_v52 = vsel %vm546_vm2, %v735_v61, 0.0  ;;  %v652_v41 = vadd.f32 %v651_v7, %v650_v51  ;;  %v855_v5 = vsel %vm546_vm2, %v736_v50, 0.0 }
 0x117   :  { %v854_v61 = vadd.f32 %v853_v52, %v852_v30  ;;  %v694_v7 = vmul.f32 %v3205_v39, %v3205_v39  ;;  %v764_v52 = vsel %vm546_vm2, %v693_v10, 0.0  ;;  %v3231_v50 = vadd.f32 %v2897_v14, %v2885_v8 }
 0x118   :  { %v654_v30 = vadd.f32 %v653_v54, %v652_v41 }
 0x119   :  { %4728 = vst [vmem:[#allocation16_spill] sm:$0xff] %v3231_v50  ;;  %v766_v8 = vsel %vm546_vm2, %v694_v7, 0.0 }
 0x11a   :  { %v3171_v48 = vpop.f32.mrf.mxu2 }
 0x11b   :  { %v1348_v55 = vpop.f32.mrf.mxu1 }
 0x11c   :  { %v1349_v43 = vadd.f32 %v2977_v47, %v1348_v55  ;;  %v762_v55 = vsel %vm546_vm2, %v692_v36, 0.0  ;;  %v3221_v36 = vadd.f32 %v2897_v14, %v2982_v59  ;;  %v655_v59 = vsel %vm546_vm2, %v3200_v2, 0.0 }
 0x11d   :  { %v763_v20 = vadd.f32 %v762_v55, %v761_v19  ;;  %v564_v19 = vsel %vm546_vm2, %v3205_v39, 0.0  ;;  %v856_v55 = vadd.f32 %v855_v5, %v854_v61  ;;  %v656_v54 = vadd.f32 %v655_v59, %v654_v30 }
 0x11e   :  { %v1371_v60 = vmax.f32 %v1349_v43, 0.0  ;;  %2094 = vrot.lane.b32.xlu2 %v1349_v43, %s2595_s26  ;;  %v563_v43 = vadd.f32 %v562_v4, %v561_v0  ;;  %v738_v41 = vmul.f32 %v3221_v36, %v3221_v36  ;;  %v566_v61 = vsel %vm546_vm2, %v3231_v50, 0.0 }
 0x11f   :  { %v765_v4 = vadd.f32 %v764_v52, %v763_v20  ;;  %v695_v5 = vmul.f32 %v3231_v50, %v3231_v50  ;;  %v3261_v52 = vadd.f32 %v2897_v14, %v3050_v3  ;;  %v3273_v3 = vadd.f32 %v2897_v14, %v2918_v22 }
 0x120   :  { %v1380_v11 = vpack.c.bf16 %v1371_v60, %v1370_v26  ;;  %v737_v60 = vmul.f32 %v3200_v2, %v3200_v2  ;;  %v565_v10 = vadd.f32 %v564_v19, %v563_v43  ;;  %v859_v7 = vsel %vm546_vm2, %v738_v41, 0.0 }
 0x121   :  { %v767_v59 = vadd.f32 %v766_v8, %v765_v4  ;;  %v768_v23 = vsel %vm546_vm2, %v695_v5, 0.0  ;;  %4730 = vst [vmem:[#allocation18_spill] sm:$0xff] %v3273_v3  ;;  %v3281_v5 = vadd.f32 %v2897_v14, %v3094_v6  ;;  %v661_v22 = vsel %vm546_vm2, %v3261_v52, 0.0 }
 0x122   :  { %v3213_v62 = vpop.f32.mrf.mxu2  ;;  %2410 = vmatmul.msk.bf16.gmra.mxu3 %vm546_vm2, %v1380_v11  ;;  %v857_v0 = vsel %vm546_vm2, %v737_v60, 0.0  ;;  %v3241_v11 = vadd.f32 %v2897_v14, %v3006_v46  ;;  %v3252_v60 = vadd.f32 %v2897_v14, %v2892_v12  ;;  %v657_v46 = vsel %vm546_vm2, %v3221_v36, 0.0 }
 0x123   :  { %v1351_v51 = vpop.f32.mrf.mxu1  ;;  %v858_v20 = vadd.f32 %v857_v0, %v856_v55  ;;  %v567_v50 = vadd.f32 %v566_v61, %v565_v10  ;;  %v658_v39 = vadd.f32 %v657_v46, %v656_v54  ;;  %v740_v61 = vmul.f32 %v3261_v52, %v3261_v52  ;;  %4731 = vst [vmem:[#allocation19_spill] sm:$0xff] %v3281_v5 }
 0x124   :  { %v1352_v26 = vadd.f32 %v2977_v47, %v1351_v51  ;;  %v3244_v51 = vpop.f32.mrf.mxu0  ;;  %4729 = vst [vmem:[#allocation17_spill] sm:$0xff] %v3252_v60  ;;  %v739_v30 = vmul.f32 %v3241_v11, %v3241_v11  ;;  %v568_v55 = vsel %vm546_vm2, %v3252_v60, 0.0  ;;  %v696_v0 = vmul.f32 %v3252_v60, %v3252_v60 }
 0x125   :  { %v659_v41 = vsel %vm546_vm2, %v3241_v11, 0.0  ;;  %v860_v4 = vadd.f32 %v859_v7, %v858_v20  ;;  %v769_v60 = vadd.f32 %v768_v23, %v767_v59  ;;  %v569_v33 = vadd.f32 %v568_v55, %v567_v50 }
 0x126   :  { %2096 = vrot.lane.b32.xlu0 %v1352_v26, %s2595_s26  ;;  %v1372_v10 = vmax.f32 %v1352_v26, 0.0  ;;  %v861_v54 = vsel %vm546_vm2, %v739_v30, 0.0  ;;  %v660_v46 = vadd.f32 %v659_v41, %v658_v39  ;;  %v3287_v26 = vadd.f32 %v2897_v14, %v3132_v9 }
 0x127   :  { %v770_v20 = vsel %vm546_vm2, %v696_v0, 0.0  ;;  %v697_v7 = vmul.f32 %v3273_v3, %v3273_v3  ;;  %v3294_v6 = vadd.f32 %v2897_v14, %v2955_v13  ;;  %v862_v39 = vadd.f32 %v861_v54, %v860_v4 }
 0x128   :  { %4732 = vst [vmem:[#allocation20_spill] sm:$0xff] %v3287_v26  ;;  %v570_v50 = vsel %vm546_vm2, %v3273_v3, 0.0  ;;  %v863_v9 = vsel %vm546_vm2, %v740_v61, 0.0  ;;  %v741_v59 = vmul.f32 %v3281_v5, %v3281_v5  ;;  %v662_v55 = vadd.f32 %v661_v22, %v660_v46 }
 0x129   :  { %4733 = vst [vmem:[#allocation21_spill] sm:$0xff] %v3294_v6  ;;  %v771_v41 = vadd.f32 %v770_v20, %v769_v60  ;;  %v663_v4 = vsel %vm546_vm2, %v3281_v5, 0.0  ;;  %v571_v54 = vadd.f32 %v570_v50, %v569_v33  ;;  %v572_v61 = vsel %vm546_vm2, %v3294_v6, 0.0 }
 0x12a   :  { %v536_v43 = vpop.f32.mrf.mxu2  ;;  %v864_v46 = vadd.f32 %v863_v9, %v862_v39  ;;  %v865_v60 = vsel %vm546_vm2, %v741_v59, 0.0  ;;  %v698_v33 = vmul.f32 %v3294_v6, %v3294_v6  ;;  %v3336_v20 = vadd.f32 %v2897_v14, %v2994_v25 }
 0x12b   :  { %v1353_v19 = vpop.f32.mrf.mxu1 }
 0x12c   :  { %v1354_v12 = vadd.f32 %v2977_v47, %v1353_v19  ;;  %v3296_v30 = vpop.f32.mrf.mxu0  ;;  %4736 = vst [vmem:[#allocation24_spill] sm:$0xff] %v3336_v20  ;;  %v866_v3 = vadd.f32 %v865_v60, %v864_v46 }
 0x12e   :  { %v1373_v8 = vmax.f32 %v1354_v12, 0.0  ;;  %2098 = vrot.lane.b32.xlu1 %v1354_v12, %s2595_s26  ;;  %v3306_v12 = vadd.f32 %v2897_v14, %v3171_v48  ;;  %v772_v48 = vsel %vm546_vm2, %v697_v7, 0.0  ;;  %v664_v7 = vadd.f32 %v663_v4, %v662_v55 }
 0x130   :  { %v1381_v19 = vpack.c.bf16 %v1373_v8, %v1372_v10  ;;  %4734 = vst [vmem:[#allocation22_spill] sm:$0xff] %v3306_v12  ;;  %v742_v10 = vmul.f32 %v3287_v26, %v3287_v26  ;;  %v3317_v8 = vadd.f32 %v2897_v14, %v3213_v62  ;;  %v743_v22 = vmul.f32 %v3306_v12, %v3306_v12 }
 0x131   :  { %v3330_v62 = vadd.f32 %v2897_v14, %v536_v43  ;;  %v667_v50 = vsel %vm546_vm2, %v3306_v12, 0.0  ;;  %v773_v43 = vadd.f32 %v772_v48, %v771_v41 }
 0x132   :  { %v538_v23 = vpop.f32.mrf.mxu2  ;;  %2411 = vmatmul.msk.bf16.gmra.mxu3 %vm546_vm2, %v1381_v19  ;;  %v665_v19 = vsel %vm546_vm2, %v3287_v26, 0.0  ;;  %v867_v39 = vsel %vm546_vm2, %v742_v10, 0.0  ;;  %v744_v9 = vmul.f32 %v3317_v8, %v3317_v8  ;;  %v869_v25 = vsel %vm546_vm2, %v743_v22, 0.0 }
 0x133   :  { %v1356_v13 = vpop.f32.mrf.mxu1  ;;  %4735 = vst [vmem:[#allocation23_spill] sm:$0xff] %v3330_v62  ;;  %v3344_v59 = vadd.f32 %v2897_v14, %v538_v23  ;;  %v666_v6 = vadd.f32 %v665_v19, %v664_v7  ;;  %v669_v55 = vsel %vm546_vm2, %v3317_v8, 0.0  ;;  %v745_v4 = vmul.f32 %v3330_v62, %v3330_v62 }
 0x134   :  { %v3309_v0 = vadd.f32 %v2977_v47, %v1356_v13  ;;  %v573_v13 = vadd.f32 %v572_v61, %v571_v54  ;;  %v774_v23 = vsel %vm546_vm2, %v698_v33, 0.0  ;;  %v868_v5 = vadd.f32 %v867_v39, %v866_v3  ;;  %v3355_v54 = vpop.f32.mrf.mxu0 }
 0x135   :  { %4737 = vst [vmem:[#allocation25_spill] sm:$0xff] %v3344_v59  ;;  %v668_v41 = vadd.f32 %v667_v50, %v666_v6  ;;  %v574_v61 = vsel %vm546_vm2, %v3336_v20, 0.0  ;;  %v871_v46 = vsel %vm546_vm2, %v744_v9, 0.0  ;;  %v671_v60 = vsel %vm546_vm2, %v3330_v62, 0.0 }
 0x136   :  { %2100 = vrot.lane.b32.xlu2 %v3309_v0, %s2595_s26  ;;  %v699_v19 = vmul.f32 %v3336_v20, %v3336_v20  ;;  %v3369_v3 = vadd.f32 %v2897_v14, %v3040_v32  ;;  %v870_v6 = vadd.f32 %v869_v25, %v868_v5  ;;  %v873_v22 = vsel %vm546_vm2, %v745_v4, 0.0 }
 0x137   :  { %v673_v33 = vsel %vm546_vm2, %v3344_v59, 0.0  ;;  %v775_v9 = vadd.f32 %v774_v23, %v773_v43  ;;  %v575_v20 = vadd.f32 %v574_v61, %v573_v13  ;;  %v3387_v43 = vadd.f32 %v2897_v14, %v3092_v34 }
 0x138   :  { %v872_v39 = vadd.f32 %v871_v46, %v870_v6  ;;  %v776_v5 = vsel %vm546_vm2, %v699_v19, 0.0  ;;  %v576_v25 = vsel %vm546_vm2, %v3369_v3, 0.0 }
 0x139   :  { %v777_v19 = vadd.f32 %v776_v5, %v775_v9  ;;  %v577_v6 = vadd.f32 %v576_v25, %v575_v20  ;;  %v1374_v25 = vmax.f32 %v3309_v0, 0.0 }
 0x13a   :  { %v541_v26 = vpop.f32.mrf.mxu2 }
 0x13b   :  { %v3352_v10 = vadd.f32 %v2897_v14, %v541_v26  ;;  %v1358_v12 = vpop.f32.mrf.mxu1  ;;  %v746_v26 = vmul.f32 %v3344_v59, %v3344_v59  ;;  %v700_v59 = vmul.f32 %v3369_v3, %v3369_v3 }
 0x13c   :  { %v1359_v48 = vadd.f32 %v2977_v47, %v1358_v12  ;;  %v670_v12 = vadd.f32 %v669_v55, %v668_v41  ;;  %v874_v55 = vadd.f32 %v873_v22, %v872_v39 }
 0x13d   :  { %v747_v7 = vmul.f32 %v3352_v10, %v3352_v10  ;;  %v875_v62 = vsel %vm546_vm2, %v746_v26, 0.0  ;;  %v675_v32 = vsel %vm546_vm2, %v3352_v10, 0.0  ;;  %v778_v34 = vsel %vm546_vm2, %v700_v59, 0.0 }
 0x13e   :  { %2102 = vrot.lane.b32.xlu0 %v1359_v48, %s2595_s26  ;;  %v672_v50 = vadd.f32 %v671_v60, %v670_v12  ;;  %v876_v61 = vadd.f32 %v875_v62, %v874_v55  ;;  %v441_v12 = vpop.f32.mrf.mxu0  ;;  %v3402_v62 = vadd.f32 %v2897_v14, %v3144_v42 }
 0x13f   :  { %v877_v13 = vsel %vm546_vm2, %v747_v7, 0.0  ;;  %v578_v7 = vsel %vm546_vm2, %v3387_v43, 0.0 }
 0x140   :  { %v674_v4 = vadd.f32 %v673_v33, %v672_v50  ;;  %v878_v22 = vadd.f32 %v877_v13, %v876_v61  ;;  %v701_v50 = vmul.f32 %v3387_v43, %v3387_v43  ;;  %v579_v5 = vadd.f32 %v578_v7, %v577_v6 }
 0x141   :  { %v702_v42 = vmul.f32 %v3402_v62, %v3402_v62  ;;  %v3414_v13 = vadd.f32 %v2897_v14, %v3192_v63  ;;  %v3423_v63 = vadd.f32 %v2897_v14, %v3244_v51 }
 0x142   :  { %v543_v41 = vpop.f32.mrf.mxu2  ;;  %v676_v46 = vadd.f32 %v675_v32, %v674_v4  ;;  %v1375_v32 = vmax.f32 %v1359_v48, 0.0  ;;  %v779_v4 = vadd.f32 %v778_v34, %v777_v19  ;;  %v780_v48 = vsel %vm546_vm2, %v701_v50, 0.0 }
 0x143   :  { %v3391_v23 = vadd.f32 %v2897_v14, %v543_v41  ;;  %v580_v41 = vsel %vm546_vm2, %v3402_v62, 0.0  ;;  %v1361_v34 = vpop.f32.mrf.mxu1  ;;  %v703_v7 = vmul.f32 %v3414_v13, %v3414_v13  ;;  %v584_v51 = vsel %vm546_vm2, %v3423_v63, 0.0 }
 0x144   :  { %v781_v19 = vadd.f32 %v780_v48, %v779_v4 }
 0x145   :  { %v677_v60 = vsel %vm546_vm2, %v3391_v23, 0.0  ;;  %v748_v26 = vmul.f32 %v3391_v23, %v3391_v23  ;;  %v784_v4 = vsel %vm546_vm2, %v703_v7, 0.0 }
 0x146   :  { %v678_v33 = vadd.f32 %v677_v60, %v676_v46  ;;  %v1382_v60 = vpack.c.bf16 %v1375_v32, %v1374_v25 }
 0x147   :  { %v879_v39 = vsel %vm546_vm2, %v748_v26, 0.0  ;;  %v581_v26 = vadd.f32 %v580_v41, %v579_v5 }
 0x148   :  { %v679_v9 = vrot.slane %v678_v33, 4  ;;  %v880_v20 = vadd.f32 %v879_v39, %v878_v22  ;;  %2412 = vmatmul.msk.bf16.gmra.mxu3 %vm546_vm2, %v1382_v60  ;;  %v782_v22 = vsel %vm546_vm2, %v702_v42, 0.0  ;;  %v443_v39 = vpop.f32.mrf.mxu0 }
 0x14a   :  { %v680_v55 = vadd.f32 %v679_v9, %v678_v33  ;;  %v881_v59 = vrot.slane %v880_v20, 4  ;;  %v582_v33 = vsel %vm546_vm2, %v3414_v13, 0.0  ;;  %v3428_v9 = vadd.f32 %v2977_v47, %v1361_v34 }
 0x14b   :  { %v704_v47 = vmul.f32 %v3423_v63, %v3423_v63 }
 0x14c   :  { %v681_v61 = vrot.slane %v680_v55, 2  ;;  %v882_v46 = vadd.f32 %v881_v59, %v880_v20  ;;  %v583_v20 = vadd.f32 %v582_v33, %v581_v26  ;;  %2104 = vrot.lane.b32.xlu1 %v3428_v9, %s2595_s26  ;;  %v3436_v59 = vadd.f32 %v2897_v14, %v3296_v30 }
 0x14d   :  { %v3449_v30 = vadd.f32 %v2897_v14, %v3355_v54 }
 0x14e   :  { %v682_v0 = vadd.f32 %v681_v61, %v680_v55  ;;  %v883_v6 = vrot.slane %v882_v46, 2  ;;  %v783_v55 = vadd.f32 %v782_v22, %v781_v19  ;;  %v585_v48 = vadd.f32 %v584_v51, %v583_v20 }
 0x14f   :  { %v586_v26 = vsel %vm546_vm2, %v3436_v59, 0.0  ;;  %v706_v54 = vmul.f32 %v3449_v30, %v3449_v30 }
 0x150   :  { %v683_v50 = vrot.slane %v682_v0, 1  ;;  %v884_v32 = vadd.f32 %v883_v6, %v882_v46  ;;  %v785_v60 = vadd.f32 %v784_v4, %v783_v55  ;;  %v705_v6 = vmul.f32 %v3436_v59, %v3436_v59  ;;  %v446_v34 = vpop.f32.mrf.mxu0 }
 0x151   :  { %v587_v22 = vadd.f32 %v586_v26, %v585_v48  ;;  %v3468_v4 = vadd.f32 %v2897_v14, %v443_v39 }
 0x152   :  { %v684_v5 = vadd.f32 %v683_v50, %v682_v0  ;;  %v885_v25 = vrot.slane %v884_v32, 1  ;;  %v786_v0 = vsel %vm546_vm2, %v704_v47, 0.0  ;;  %v588_v50 = vsel %vm546_vm2, %v3449_v30, 0.0 }
 0x153   :  { %v787_v7 = vadd.f32 %v786_v0, %v785_v60  ;;  %v788_v20 = vsel %vm546_vm2, %v705_v6, 0.0  ;;  %4738 = vst [vmem:[#allocation26_spill] sm:$0xff] %v3468_v4  ;;  %v708_v39 = vmul.f32 %v3468_v4, %v3468_v4  ;;  %v3485_v6 = vadd.f32 %v2897_v14, %v2785_v31 }
 0x154   :  { %v886_v41 = vadd.f32 %v885_v25, %v884_v32  ;;  %v3441_v42 = vmul.f32 0.00390625, %v684_v5  ;;  %v3457_v32 = vadd.f32 %v2897_v14, %v441_v12  ;;  %v589_v25 = vadd.f32 %v588_v50, %v587_v22 }
 0x155   :  { %v789_v55 = vadd.f32 %v788_v20, %v787_v7  ;;  %v790_v12 = vsel %vm546_vm2, %v706_v54, 0.0  ;;  %4740 = vst [vmem:[#allocation28_spill] sm:$0xff] %v3485_v6  ;;  %v3503_v7 = vadd.f32 %v2897_v14, %v2833_v49 }
 0x156   :  { %v890_v61 = vmul.f32 0.00390625, %v886_v41  ;;  %v892_v46 = vmul.f32 %v3441_v42, %v3441_v42  ;;  %v590_v51 = vsel %vm546_vm2, %v3457_v32, 0.0  ;;  %v707_v47 = vmul.f32 %v3457_v32, %v3457_v32 }
 0x157   :  { %v591_v41 = vadd.f32 %v590_v51, %v589_v25  ;;  %v791_v48 = vadd.f32 %v790_v12, %v789_v55  ;;  %4744 = vst [vmem:[#allocation32_spill] sm:$0xff] %v3503_v7  ;;  %v711_v25 = vmul.f32 %v3485_v6, %v3485_v6 }
 0x158   :  { %v894_v19 = vsub.f32 %v890_v61, %v892_v46  ;;  %v592_v61 = vsel %vm546_vm2, %v3468_v4, 0.0  ;;  %v3476_v46 = vadd.f32 %v2897_v14, %v446_v34  ;;  %v792_v26 = vsel %vm546_vm2, %v707_v47, 0.0  ;;  %v448_v0 = vpop.f32.mrf.mxu0 }
 0x159   :  { %v3499_v34 = vadd.f32 %v2897_v14, %v2821_v44  ;;  %v593_v31 = vadd.f32 %v592_v61, %v591_v41  ;;  %v793_v50 = vadd.f32 %v792_v26, %v791_v48  ;;  %v3509_v54 = vadd.f32 %v2897_v14, %v448_v0 }
 0x15a   :  { %v896_v33 = vmax.f32 %v894_v19, 0.0  ;;  %4739 = vst [vmem:[#allocation27_spill] sm:$0xff] %v3476_v46  ;;  %v3489_v19 = vadd.f32 %v2897_v14, %v2797_v35  ;;  %v594_v20 = vsel %vm546_vm2, %v3476_v46, 0.0  ;;  %v794_v44 = vsel %vm546_vm2, %v708_v39, 0.0 }
 0x15b   :  { %4743 = vst [vmem:[#allocation31_spill] sm:$0xff] %v3499_v34  ;;  %v709_v49 = vmul.f32 %v3476_v46, %v3476_v46  ;;  %v595_v47 = vadd.f32 %v594_v20, %v593_v31  ;;  %v795_v41 = vadd.f32 %v794_v44, %v793_v50  ;;  %v596_v48 = vsel %vm546_vm2, %v3509_v54, 0.0 }
 0x15c   :  { %v3462_v5 = vadd.f32 1e-05, %v896_v33  ;;  %4741 = vst [vmem:[#allocation29_spill] sm:$0xff] %v3489_v19  ;;  %v3495_v33 = vadd.f32 %v2897_v14, %v2809_v40  ;;  %v3513_v40 = vadd.f32 %v2897_v14, %v2845_v53  ;;  %v712_v55 = vmul.f32 %v3489_v19, %v3489_v19 }
 0x15d   :  { %4745 = vst [vmem:[#allocation33_spill] sm:$0xff] %v3509_v54  ;;  %v714_v53 = vmul.f32 %v3499_v34, %v3499_v34  ;;  %v715_v14 = vmul.f32 %v3503_v7, %v3503_v7  ;;  %v598_v61 = vsel %vm546_vm2, %v3485_v6, 0.0  ;;  %v796_v39 = vsel %vm546_vm2, %v709_v49, 0.0 }
 0x15e   :  { %2494 = vrsqrt.f32 %v3462_v5  ;;  %4742 = vst [vmem:[#allocation30_spill] sm:$0xff] %v3495_v33  ;;  %v713_v12 = vmul.f32 %v3495_v33, %v3495_v33  ;;  %v716_v26 = vmul.f32 %v3513_v40, %v3513_v40  ;;  %v710_v0 = vmul.f32 %v3509_v54, %v3509_v54 }
 0x15f   :  { %4746 = vst [vmem:[#allocation34_spill] sm:$0xff] %v3513_v40  ;;  %v600_v31 = vsel %vm546_vm2, %v3489_v19, 0.0  ;;  %v802_v50 = vsel %vm546_vm2, %v712_v55, 0.0  ;;  %v602_v20 = vsel %vm546_vm2, %v3495_v33, 0.0  ;;  %v3548_v49 = vsel %vm546_vm2, %v3499_v34, 0.0  ;;  %v4753_v34 = vld [vmem:[#allocation22_spill] sm:$0xff] }
 0x160   :  { %v3544_v44 = vsel %vm546_vm2, %v713_v12, 0.0  ;;  %v597_v6 = vadd.f32 %v596_v48, %v595_v47  ;;  %v3551_v54 = vsel %vm546_vm2, %v714_v53, 0.0  ;;  %v3558_v55 = vsel %vm546_vm2, %v715_v14, 0.0 }
 0x161   :  { %v3562_v12 = vsel %vm546_vm2, %v3513_v40, 0.0  ;;  %v3565_v33 = vsel %vm546_vm2, %v716_v26, 0.0  ;;  %v798_v53 = vsel %vm546_vm2, %v710_v0, 0.0  ;;  %v951_v14 = vsub.f32 %v2906_v17, %v3441_v42 }
 0x162   :  { %v954_v26 = vsub.f32 %v2916_v21, %v3441_v42  ;;  %v955_v47 = vsub.f32 %v2927_v27, %v3441_v42  ;;  %v599_v0 = vadd.f32 %v598_v61, %v597_v6  ;;  %vm915_vm4 = vweird.f32 %v3462_v5  ;;  %v4748_v6 = vld [vmem:[#allocation5_spill] sm:$0xff] }
 0x163   :  { %v957_v17 = vsub.f32 %v2946_v56, %v3441_v42  ;;  %v960_v21 = vsub.f32 %v2988_v1, %v3441_v42  ;;  %v961_v27 = vsub.f32 %v3002_v29, %v3441_v42  ;;  %v963_v61 = vsub.f32 %v4748_v6, %v3441_v42 }
 0x164   :  { %v3478_v60 = vpop.eup %2494  ;;  %v966_v1 = vsub.f32 %v3101_v24, %v3441_v42 }
 0x165   :  { %v910_v22 = vmul.f32 %v3478_v60, %v3462_v5  ;;  %vm916_vm3 = vweird.f32 %v3478_v60 }
 0x166   :  { %vm917_vm5 = vmor %vm915_vm4, %vm916_vm3 }
 0x167   :  { %v911_v35 = vmul.f32 %v3478_v60, %v910_v22  ;;  %v800_v22 = vsel %vm546_vm2, %v711_v25, 0.0  ;;  %v3555_v25 = vsel %vm546_vm2, %v3503_v7, 0.0 }
 0x169   :  { %v912_v51 = vmul.f32 0.5, %v911_v35 }
 0x16b   :  { %v913_v35 = vsub.f32 1.5, %v912_v51  ;;  %v797_v51 = vadd.f32 %v796_v39, %v795_v41  ;;  %v952_v41 = vsub.f32 %v2903_v16, %v3441_v42  ;;  %v953_v39 = vsub.f32 %v2909_v18, %v3441_v42 }
 0x16c   :  { %v958_v16 = vsub.f32 %v2958_v15, %v3441_v42  ;;  %v959_v18 = vsub.f32 %v2967_v28, %v3441_v42  ;;  %v4749_v15 = vld [vmem:[#allocation7_spill] sm:$0xff]  ;;  %v4750_v28 = vld [vmem:[#allocation9_spill] sm:$0xff] }
 0x16d   :  { %v914_v48 = vmul.f32 %v3478_v60, %v913_v35  ;;  %v956_v35 = vsub.f32 %v2937_v38, %v3441_v42  ;;  %v799_v40 = vadd.f32 %v798_v53, %v797_v51  ;;  %v4747_v38 = vld [vmem:[#allocation3_spill] sm:$0xff]  ;;  %v964_v51 = vsub.f32 %v4749_v15, %v3441_v42 }
 0x16e   :  { %v962_v56 = vsub.f32 %v4747_v38, %v3441_v42  ;;  %v965_v53 = vsub.f32 %v4750_v28, %v3441_v42 }
 0x16f   :  { %v3595_v5 = vsel %vm917_vm5, %v3478_v60, %v914_v48  ;;  %v601_v60 = vadd.f32 %v600_v31, %v599_v0  ;;  %v801_v15 = vadd.f32 %v800_v22, %v799_v40  ;;  %v3623_v31 = vld [vmem:[%s4667_s5] ss:$0 sm:$0xff]  ;;  %v4755_v40 = vld [vmem:[#allocation25_spill] sm:$0xff] }
 0x170   :  { %v1015_v7 = vmul.f32 %v951_v14, %v3595_v5  ;;  %v1016_v24 = vmul.f32 %v952_v41, %v3595_v5  ;;  %v1017_v29 = vmul.f32 %v953_v39, %v3595_v5  ;;  %v1018_v14 = vmul.f32 %v954_v26, %v3595_v5  ;;  %v4751_v41 = vld [vmem:[#allocation19_spill] sm:$0xff]  ;;  %v4752_v39 = vld [vmem:[#allocation20_spill] sm:$0xff] }
 0x171   :  { %v1019_v38 = vmul.f32 %v955_v47, %v3595_v5  ;;  %v603_v48 = vadd.f32 %v602_v20, %v601_v60  ;;  %v1020_v19 = vmul.f32 %v956_v35, %v3595_v5  ;;  %v803_v22 = vadd.f32 %v802_v50, %v801_v15  ;;  %v3649_v20 = vld [vmem:[%s4668_s6] ss:$0 sm:$0xff]  ;;  %v4754_v47 = vld [vmem:[#allocation23_spill] sm:$0xff] }
 0x172   :  { %v1021_v26 = vmul.f32 %v957_v17, %v3595_v5  ;;  %v1083_v46 = vmul.f32 %v3623_v31, %v1015_v7  ;;  %v1084_v28 = vmul.f32 %v3623_v31, %v1016_v24  ;;  %v1085_v6 = vmul.f32 %v3623_v31, %v1017_v29 }
 0x173   :  { %v1022_v50 = vmul.f32 %v958_v16, %v3595_v5  ;;  %v1086_v17 = vmul.f32 %v3623_v31, %v1018_v14  ;;  %v1023_v29 = vmul.f32 %v959_v18, %v3595_v5  ;;  %v1087_v15 = vmul.f32 %v3623_v31, %v1019_v38 }
 0x174   :  { %v605_v24 = vadd.f32 %v3548_v49, %v603_v48  ;;  %v1024_v0 = vmul.f32 %v960_v21, %v3595_v5  ;;  %v1025_v60 = vmul.f32 %v961_v27, %v3595_v5  ;;  %v1088_v4 = vmul.f32 %v3623_v31, %v1020_v19 }
 0x175   :  { %v805_v35 = vadd.f32 %v3544_v44, %v803_v22  ;;  %v1089_v16 = vmul.f32 %v3623_v31, %v1021_v26  ;;  %v1151_v14 = vadd.f32 %v3649_v20, %v1083_v46  ;;  %v1152_v7 = vadd.f32 %v3649_v20, %v1084_v28 }
 0x176   :  { %v1153_v18 = vadd.f32 %v3649_v20, %v1085_v6  ;;  %v982_v38 = vsub.f32 %v3391_v23, %v3441_v42  ;;  %v1026_v49 = vmul.f32 %v962_v56, %v3595_v5  ;;  %v1090_v21 = vmul.f32 %v3623_v31, %v1022_v50 }
 0x177   :  { %v1154_v27 = vadd.f32 %v3649_v20, %v1086_v17  ;;  %v1027_v19 = vmul.f32 %v963_v61, %v3595_v5  ;;  %v1091_v44 = vmul.f32 %v3623_v31, %v1023_v29  ;;  %v1155_v48 = vadd.f32 %v3649_v20, %v1087_v15  ;;  %1215 = vst.msk [vmem:[%s4672_s13 + $0x100] sm:$0xff] %vm546_vm2, %v1151_v14 }
 0x178   :  { %v607_v46 = vadd.f32 %v3555_v25, %v605_v24  ;;  %v1028_v6 = vmul.f32 %v964_v51, %v3595_v5  ;;  %v1029_v56 = vmul.f32 %v965_v53, %v3595_v5  ;;  %v1092_v28 = vmul.f32 %v3623_v31, %v1024_v0  ;;  %1216 = vst.msk [vmem:[%s4672_s13 + $0x108] sm:$0xff] %vm546_vm2, %v1152_v7 }
 0x179   :  { %v1156_v22 = vadd.f32 %v3649_v20, %v1088_v4  ;;  %v1030_v61 = vmul.f32 %v966_v1, %v3595_v5  ;;  %v1093_v26 = vmul.f32 %v3623_v31, %v1025_v60  ;;  %v1157_v50 = vadd.f32 %v3649_v20, %v1089_v16  ;;  %1217 = vst.msk [vmem:[%s4672_s13 + $0x110] sm:$0xff] %vm546_vm2, %v1153_v18 }
 0x17a   :  { %v807_v25 = vadd.f32 %v3551_v54, %v805_v35  ;;  %v4756_v4 = vsub.f32 %v3121_v58, %v3441_v42  ;;  %v4757_v53 = vsub.f32 %v3142_v45, %v3441_v42  ;;  %v1094_v0 = vmul.f32 %v3623_v31, %v1026_v49  ;;  %1218 = vst.msk [vmem:[%s4672_s13 + $0x118] sm:$0xff] %vm546_vm2, %v1154_v27  ;;  %v1363_v54 = vpop.f32.mrf.mxu1  ;;  %v2594_v49 = vld [vmem:[%s4666_s8] ss:$0 sm:$0xff] }
 0x17b   :  { %v1158_v60 = vadd.f32 %v3649_v20, %v1090_v21  ;;  %v4758_v58 = vsub.f32 %v3160_v37, %v3441_v42  ;;  %v4759_v45 = vsub.f32 %v3179_v57, %v3441_v42  ;;  %v1095_v7 = vmul.f32 %v3623_v31, %v1027_v19  ;;  %1219 = vst.msk [vmem:[%s4672_s13 + $0x120] sm:$0xff] %vm546_vm2, %v1155_v48 }
 0x17c   :  { %v1031_v51 = vmul.f32 %v4756_v4, %v3595_v5  ;;  %v1032_v1 = vmul.f32 %v4757_v53, %v3595_v5  ;;  %v1159_v29 = vadd.f32 %v3649_v20, %v1091_v44  ;;  %v4760_v15 = vsub.f32 %v3200_v2, %v3441_v42  ;;  %1220 = vst.msk [vmem:[%s4672_s13 + $0x128] sm:$0xff] %vm546_vm2, %v1156_v22 }
 0x17d   :  { %v1033_v35 = vmul.f32 %v4758_v58, %v3595_v5  ;;  %v1034_v17 = vmul.f32 %v4759_v45, %v3595_v5  ;;  %v1096_v24 = vmul.f32 %v3623_v31, %v1028_v6  ;;  %v1097_v16 = vmul.f32 %v3623_v31, %v1029_v56  ;;  %1221 = vst.msk [vmem:[%s4672_s13 + $0x130] sm:$0xff] %vm546_vm2, %v1157_v50 }
 0x17e   :  { %v1035_v37 = vmul.f32 %v4760_v15, %v3595_v5  ;;  %v1160_v57 = vadd.f32 %v3649_v20, %v1092_v28  ;;  %v1161_v14 = vadd.f32 %v3649_v20, %v1093_v26  ;;  %v609_v2 = vadd.f32 %v3562_v12, %v607_v46  ;;  %1222 = vst.msk [vmem:[%s4672_s13 + $0x138] sm:$0xff] %vm546_vm2, %v1158_v60 }
 0x17f   :  { %v809_v18 = vadd.f32 %v3558_v55, %v807_v25  ;;  %v1364_v21 = vadd.f32 %v2594_v49, %v1363_v54  ;;  %v4761_v27 = vsub.f32 %v3221_v36, %v3441_v42  ;;  %v1098_v44 = vmul.f32 %v3623_v31, %v1030_v61  ;;  %1223 = vst.msk [vmem:[%s4672_s13 + $0x140] sm:$0xff] %vm546_vm2, %v1159_v29 }
 0x180   :  { %v1099_v48 = vmul.f32 %v3623_v31, %v1031_v51  ;;  %v1162_v6 = vadd.f32 %v3649_v20, %v1094_v0  ;;  %v1163_v55 = vadd.f32 %v3649_v20, %v1095_v7  ;;  %v610_v36 = vrot.slane %v609_v2, 4  ;;  %1224 = vst.msk [vmem:[%s4672_s13 + $0x148] sm:$0xff] %vm546_vm2, %v1160_v57 }
 0x181   :  { %v1036_v19 = vmul.f32 %v4761_v27, %v3595_v5  ;;  %v811_v12 = vadd.f32 %v3565_v33, %v809_v18  ;;  %v1377_v46 = vmax.f32 %v1364_v21, 0.0  ;;  %2106 = vrot.lane.b32.xlu2 %v1364_v21, %s2595_s26  ;;  %v4762_v56 = vsub.f32 %v3241_v11, %v3441_v42  ;;  %1225 = vst.msk [vmem:[%s4672_s13 + $0x150] sm:$0xff] %vm546_vm2, %v1161_v14 }
 0x182   :  { %v1100_v22 = vmul.f32 %v3623_v31, %v1032_v1  ;;  %v1101_v61 = vmul.f32 %v3623_v31, %v1033_v35  ;;  %v1164_v26 = vadd.f32 %v3649_v20, %v1096_v24  ;;  %v1165_v33 = vadd.f32 %v3649_v20, %v1097_v16  ;;  %1226 = vst.msk [vmem:[%s4672_s13 + $0x158] sm:$0xff] %vm546_vm2, %v1162_v6 }
 0x183   :  { %v1037_v28 = vmul.f32 %v4762_v56, %v3595_v5  ;;  %v611_v11 = vadd.f32 %v610_v36, %v609_v2  ;;  %v812_v50 = vrot.slane %v811_v12, 4  ;;  %v4763_v25 = vmax.f32 %v3428_v9, 0.0  ;;  %1227 = vst.msk [vmem:[%s4672_s13 + $0x160] sm:$0xff] %vm546_vm2, %v1163_v55 }
 0x184   :  { %v4764_v51 = vsub.f32 %v3261_v52, %v3441_v42  ;;  %v4765_v1 = vsub.f32 %v4751_v41, %v3441_v42  ;;  %v1102_v60 = vmul.f32 %v3623_v31, %v1034_v17  ;;  %v1166_v54 = vadd.f32 %v3649_v20, %v1098_v44  ;;  %1228 = vst.msk [vmem:[%s4672_s13 + $0x168] sm:$0xff] %vm546_vm2, %v1164_v26 }
 0x185   :  { %v1383_v4 = vpack.c.bf16 %v1377_v46, %v4763_v25  ;;  %v1103_v9 = vmul.f32 %v3623_v31, %v1035_v37  ;;  %v1167_v58 = vadd.f32 %v3649_v20, %v1099_v48  ;;  %v612_v52 = vrot.slane %v611_v11, 2  ;;  %1229 = vst.msk [vmem:[%s4672_s13 + $0x170] sm:$0xff] %vm546_vm2, %v1165_v33 }
 0x186   :  { %v1038_v53 = vmul.f32 %v4764_v51, %v3595_v5  ;;  %v1039_v0 = vmul.f32 %v4765_v1, %v3595_v5  ;;  %v813_v41 = vadd.f32 %v812_v50, %v811_v12  ;;  %v4766_v35 = vsub.f32 %v4752_v39, %v3441_v42  ;;  %1230 = vst.msk [vmem:[%s4672_s13 + $0x178] sm:$0xff] %vm546_vm2, %v1166_v54 }
 0x187   :  { %2413 = vmatmul.msk.bf16.gmra.mxu3 %vm546_vm2, %v1383_v4  ;;  %v4767_v17 = vsub.f32 %v4753_v34, %v3441_v42  ;;  %v1104_v29 = vmul.f32 %v3623_v31, %v1036_v19  ;;  %v1168_v15 = vadd.f32 %v3649_v20, %v1100_v22  ;;  %v1105_v37 = vmul.f32 %v3623_v31, %v1037_v28 }
 0x188   :  { %v1040_v45 = vmul.f32 %v4766_v35, %v3595_v5  ;;  %v1169_v24 = vadd.f32 %v3649_v20, %v1101_v61  ;;  %v613_v34 = vadd.f32 %v612_v52, %v611_v11  ;;  %v814_v39 = vrot.slane %v813_v41, 2  ;;  %1231 = vst.msk [vmem:[%s4672_s13 + $0x180] sm:$0xff] %vm546_vm2, %v1167_v58 }
 0x189   :  { %v1041_v7 = vmul.f32 %v4767_v17, %v3595_v5  ;;  %v4768_v16 = vsub.f32 %v3317_v8, %v3441_v42  ;;  %v4769_v14 = vsub.f32 %v4754_v47, %v3441_v42  ;;  %v1106_v18 = vmul.f32 %v3623_v31, %v1038_v53  ;;  %1232 = vst.msk [vmem:[%s4672_s13 + $0x188] sm:$0xff] %vm546_vm2, %v1168_v15  ;;  %v4772_v15 = vld [vmem:[#allocation2_spill] sm:$0xff] }
 0x18a   :  { %v1170_v49 = vadd.f32 %v3649_v20, %v1102_v60  ;;  %v1107_v21 = vmul.f32 %v3623_v31, %v1039_v0  ;;  %v1171_v27 = vadd.f32 %v3649_v20, %v1103_v9  ;;  %v614_v8 = vrot.slane %v613_v34, 1  ;;  %1233 = vst.msk [vmem:[%s4672_s13 + $0x190] sm:$0xff] %vm546_vm2, %v1169_v24  ;;  %v4773_v24 = vld [vmem:[#allocation4_spill] sm:$0xff] }
 0x18b   :  { %v1042_v57 = vmul.f32 %v4768_v16, %v3595_v5  ;;  %v1043_v2 = vmul.f32 %v4769_v14, %v3595_v5  ;;  %v815_v47 = vadd.f32 %v814_v39, %v813_v41  ;;  %v4770_v19 = vsub.f32 %v4755_v40, %v3441_v42  ;;  %v4774_v39 = vld [vmem:[#allocation6_spill] sm:$0xff] }
 0x18c   :  { %v4771_v48 = vsub.f32 %v3352_v10, %v3441_v42  ;;  %v1108_v55 = vmul.f32 %v3623_v31, %v1040_v45  ;;  %v1172_v36 = vadd.f32 %v3649_v20, %v1104_v29  ;;  %v1109_v12 = vmul.f32 %v3623_v31, %v1041_v7  ;;  %1234 = vst.msk [vmem:[%s4672_s13 + $0x198] sm:$0xff] %vm546_vm2, %v1170_v49  ;;  %v4777_v49 = vld [vmem:[#allocation11_spill] sm:$0xff] }
 0x18d   :  { %v1044_v44 = vmul.f32 %v4770_v19, %v3595_v5  ;;  %v1173_v46 = vadd.f32 %v3649_v20, %v1105_v37  ;;  %v615_v10 = vadd.f32 %v614_v8, %v613_v34  ;;  %v816_v40 = vrot.slane %v815_v47, 1  ;;  %1235 = vst.msk [vmem:[%s4672_s13 + $0x1a0] sm:$0xff] %vm546_vm2, %v1171_v27  ;;  %v4778_v27 = vld [vmem:[#allocation12_spill] sm:$0xff] }
 0x18e   :  { %v1045_v6 = vmul.f32 %v4771_v48, %v3595_v5  ;;  %v1046_v56 = vmul.f32 %v982_v38, %v3595_v5  ;;  %v1110_v28 = vmul.f32 %v3623_v31, %v1042_v57  ;;  %v1174_v22 = vadd.f32 %v3649_v20, %v1106_v18  ;;  %1236 = vst.msk [vmem:[%s4672_s13 + $0x1a8] sm:$0xff] %vm546_vm2, %v1172_v36  ;;  %v4775_v57 = vld [vmem:[#allocation8_spill] sm:$0xff]  ;;  %v4779_v48 = vld [vmem:[#allocation13_spill] sm:$0xff] }
 0x18f   :  { %v1111_v61 = vmul.f32 %v3623_v31, %v1043_v2  ;;  %v1175_v26 = vadd.f32 %v3649_v20, %v1107_v21  ;;  %v817_v23 = vadd.f32 %v816_v40, %v815_v47  ;;  %v3881_v42 = vmul.f32 0.00390625, %v615_v10  ;;  %1237 = vst.msk [vmem:[%s4672_s13 + $0x1b0] sm:$0xff] %vm546_vm2, %v1173_v46  ;;  %v4776_v2 = vld [vmem:[#allocation10_spill] sm:$0xff]  ;;  %v4782_v40 = vld [vmem:[#allocation16_spill] sm:$0xff] }
 0x190   :  { %v1112_v5 = vmul.f32 %v3623_v31, %v1044_v44  ;;  %v1176_v38 = vadd.f32 %v3649_v20, %v1108_v55  ;;  %v1113_v33 = vmul.f32 %v3623_v31, %v1045_v6  ;;  %v1177_v11 = vadd.f32 %v3649_v20, %v1109_v12  ;;  %1238 = vst.msk [vmem:[%s4672_s13 + $0x1b8] sm:$0xff] %vm546_vm2, %v1174_v22  ;;  %v4780_v55 = vld [vmem:[#allocation14_spill] sm:$0xff]  ;;  %v4781_v12 = vld [vmem:[#allocation15_spill] sm:$0xff] }
 0x191   :  { %v889_v50 = vmul.f32 0.00390625, %v817_v23  ;;  %v891_v25 = vmul.f32 %v3881_v42, %v3881_v42  ;;  %v1114_v4 = vmul.f32 %v3623_v31, %v1046_v56  ;;  %v1178_v51 = vadd.f32 %v3649_v20, %v1110_v28  ;;  %1239 = vst.msk [vmem:[%s4672_s13 + $0x1c0] sm:$0xff] %vm546_vm2, %v1175_v26  ;;  %v4783_v28 = vld [vmem:[#allocation17_spill] sm:$0xff] }
 0x192   :  { %v1179_v53 = vadd.f32 %v3649_v20, %v1111_v61  ;;  %v1180_v0 = vadd.f32 %v3649_v20, %v1112_v5  ;;  %1240 = vst.msk [vmem:[%s4672_s13 + $0x1c8] sm:$0xff] %vm546_vm2, %v1176_v38  ;;  %v1181_v60 = vadd.f32 %v3649_v20, %v1113_v33  ;;  %v919_v37 = vsub.f32 %v4772_v15, %v3881_v42  ;;  %v4784_v61 = vld [vmem:[#allocation18_spill] sm:$0xff]  ;;  %v4785_v5 = vld [vmem:[#allocation21_spill] sm:$0xff]  ;;  %v4786_v33 = vld [vmem:[#allocation24_spill] sm:$0xff] }
 0x193   :  { %v893_v1 = vsub.f32 %v889_v50, %v891_v25  ;;  %1241 = vst.msk [vmem:[%s4672_s13 + $0x1d0] sm:$0xff] %vm546_vm2, %v1177_v11  ;;  %v1182_v9 = vadd.f32 %v3649_v20, %v1114_v4  ;;  %v920_v34 = vsub.f32 %v4773_v24, %v3881_v42  ;;  %v921_v16 = vsub.f32 %v4774_v39, %v3881_v42  ;;  %v1431_v4 = vpop.f32.mrf.mxu3 }
 0x194   :  { %1242 = vst.msk [vmem:[%s4672_s13 + $0x1d8] sm:$0xff] %vm546_vm2, %v1178_v51  ;;  %v922_v14 = vsub.f32 %v4775_v57, %v3881_v42  ;;  %v923_v18 = vsub.f32 %v4776_v2, %v3881_v42  ;;  %v924_v21 = vsub.f32 %v4777_v49, %v3881_v42  ;;  %v925_v8 = vsub.f32 %v4778_v27, %v3881_v42 }
 0x195   :  { %v895_v54 = vmax.f32 %v893_v1, 0.0  ;;  %1243 = vst.msk [vmem:[%s4672_s13 + $0x1e0] sm:$0xff] %vm546_vm2, %v1179_v53  ;;  %v926_v6 = vsub.f32 %v4779_v48, %v3881_v42  ;;  %v927_v36 = vsub.f32 %v4780_v55, %v3881_v42  ;;  %v928_v46 = vsub.f32 %v4781_v12, %v3881_v42  ;;  %v2482_v48 = vld [vmem:[%s4670_s11] sm:$0xff]  ;;  %v4789_v55 = vld [vmem:[#allocation33_spill] sm:$0xff] }
 0x196   :  { %1244 = vst.msk [vmem:[%s4672_s13 + $0x1e8] sm:$0xff] %vm546_vm2, %v1180_v0  ;;  %v929_v56 = vsub.f32 %v4782_v40, %v3881_v42  ;;  %v930_v22 = vsub.f32 %v4783_v28, %v3881_v42  ;;  %v931_v26 = vsub.f32 %v4784_v61, %v3881_v42  ;;  %v932_v38 = vsub.f32 %v4785_v5, %v3881_v42 }
 0x197   :  { %v897_v58 = vadd.f32 1e-05, %v895_v54  ;;  %1245 = vst.msk [vmem:[%s4672_s13 + $0x1f0] sm:$0xff] %vm546_vm2, %v1181_v60  ;;  %v933_v11 = vsub.f32 %v4786_v33, %v3881_v42  ;;  %v934_v50 = vsub.f32 %v3369_v3, %v3881_v42  ;;  %v935_v60 = vsub.f32 %v3387_v43, %v3881_v42  ;;  %1524 = vmatpush.bf16.msrb.mxu3 %v2482_v48 }
 0x198   :  { %1246 = vst.msk [vmem:[%s4672_s13 + $0x1f8] sm:$0xff] %vm546_vm2, %v1182_v9  ;;  %v936_v54 = vsub.f32 %v3402_v62, %v3881_v42  ;;  %v939_v43 = vsub.f32 %v3436_v59, %v3881_v42  ;;  %v941_v39 = vsub.f32 %v3457_v32, %v3881_v42 }
 0x199   :  { %2496 = vrsqrt.f32 %v897_v58  ;;  %vm905_vm7 = vweird.f32 %v897_v58 }
 0x19b   :  { %v1433_v32 = vpop.f32.mrf.mxu3 }
 0x19f   :  { %v2497_v52 = vpop.eup %2496 }
 0x1a0   :  { %v900_v41 = vmul.f32 %v2497_v52, %v897_v58  ;;  %vm906_vm6 = vweird.f32 %v2497_v52  ;;  %v937_v58 = vsub.f32 %v3414_v13, %v3881_v42 }
 0x1a1   :  { %vm907_vm8 = vmor %vm905_vm7, %vm906_vm6 }
 0x1a2   :  { %v901_v35 = vmul.f32 %v2497_v52, %v900_v41 }
 0x1a4   :  { %v902_v45 = vmul.f32 0.5, %v901_v35 }
 0x1a6   :  { %v903_v17 = vsub.f32 1.5, %v902_v45 }
 0x1a8   :  { %v904_v7 = vmul.f32 %v2497_v52, %v903_v17 }
 0x1aa   :  { %v3939_v29 = vsel %vm907_vm8, %v2497_v52, %v904_v7  ;;  %v938_v52 = vsub.f32 %v3423_v63, %v3881_v42 }
 0x1ab   :  { %v983_v47 = vmul.f32 %v919_v37, %v3939_v29  ;;  %v984_v19 = vmul.f32 %v920_v34, %v3939_v29  ;;  %v985_v44 = vmul.f32 %v921_v16, %v3939_v29  ;;  %v986_v10 = vmul.f32 %v922_v14, %v3939_v29 }
 0x1ac   :  { %v987_v23 = vmul.f32 %v923_v18, %v3939_v29  ;;  %v988_v25 = vmul.f32 %v924_v21, %v3939_v29  ;;  %v989_v51 = vmul.f32 %v925_v8, %v3939_v29  ;;  %v990_v9 = vmul.f32 %v926_v6, %v3939_v29  ;;  %v4787_v21 = vld [vmem:[#allocation26_spill] sm:$0xff]  ;;  %v4788_v8 = vld [vmem:[#allocation27_spill] sm:$0xff] }
 0x1ad   :  { %v1051_v53 = vmul.f32 %v3623_v31, %v983_v47  ;;  %v1052_v1 = vmul.f32 %v3623_v31, %v984_v19  ;;  %v1053_v0 = vmul.f32 %v3623_v31, %v985_v44  ;;  %v1054_v3 = vmul.f32 %v3623_v31, %v986_v10  ;;  %v4042_v6 = vld [vmem:[%s4671_s10] ss:$0 sm:$0xff] }
 0x1ae   :  { %v991_v41 = vmul.f32 %v927_v36, %v3939_v29  ;;  %v1055_v35 = vmul.f32 %v3623_v31, %v987_v23  ;;  %v992_v45 = vmul.f32 %v928_v46, %v3939_v29  ;;  %v993_v62 = vmul.f32 %v929_v56, %v3939_v29 }
 0x1af   :  { %v1056_v17 = vmul.f32 %v3623_v31, %v988_v25  ;;  %v1057_v7 = vmul.f32 %v3623_v31, %v989_v51  ;;  %v1119_v13 = vadd.f32 %v3649_v20, %v1051_v53  ;;  %v1120_v15 = vadd.f32 %v3649_v20, %v1052_v1 }
 0x1b0   :  { %v1121_v63 = vadd.f32 %v3649_v20, %v1053_v0  ;;  %v940_v37 = vsub.f32 %v3449_v30, %v3881_v42  ;;  %v994_v24 = vmul.f32 %v930_v22, %v3939_v29  ;;  %v1058_v59 = vmul.f32 %v3623_v31, %v990_v9 }
 0x1b1   :  { %v1122_v34 = vadd.f32 %v3649_v20, %v1054_v3  ;;  %v995_v16 = vmul.f32 %v931_v26, %v3939_v29  ;;  %v1059_v57 = vmul.f32 %v3623_v31, %v991_v41  ;;  %v1123_v14 = vadd.f32 %v3649_v20, %v1055_v35  ;;  %1183 = vst.msk [vmem:[%s4672_s13] sm:$0xff] %vm546_vm2, %v1119_v13  ;;  %v1436_v41 = vpop.f32.mrf.mxu3 }
 0x1b2   :  { %v996_v30 = vmul.f32 %v932_v38, %v3939_v29  ;;  %v997_v2 = vmul.f32 %v933_v11, %v3939_v29  ;;  %v1060_v18 = vmul.f32 %v3623_v31, %v992_v45  ;;  %v1124_v49 = vadd.f32 %v3649_v20, %v1056_v17  ;;  %1184 = vst.msk [vmem:[%s4672_s13 + $0x8] sm:$0xff] %vm546_vm2, %v1120_v15  ;;  %v4791_v17 = vld [vmem:[#allocation29_spill] sm:$0xff] }
 0x1b3   :  { %v942_v27 = vsub.f32 %v4787_v21, %v3881_v42  ;;  %v943_v47 = vsub.f32 %v4788_v8, %v3881_v42  ;;  %v1061_v19 = vmul.f32 %v3623_v31, %v993_v62  ;;  %v1125_v44 = vadd.f32 %v3649_v20, %v1057_v7  ;;  %1185 = vst.msk [vmem:[%s4672_s13 + $0x10] sm:$0xff] %vm546_vm2, %v1121_v63  ;;  %v4794_v21 = vld [vmem:[#allocation32_spill] sm:$0xff] }
 0x1b4   :  { %v944_v36 = vsub.f32 %v4789_v55, %v3881_v42  ;;  %v998_v12 = vmul.f32 %v934_v50, %v3939_v29  ;;  %v1062_v46 = vmul.f32 %v3623_v31, %v994_v24  ;;  %v1126_v10 = vadd.f32 %v3649_v20, %v1058_v59  ;;  %1186 = vst.msk [vmem:[%s4672_s13 + $0x18] sm:$0xff] %vm546_vm2, %v1122_v34  ;;  %v4792_v34 = vld [vmem:[#allocation30_spill] sm:$0xff] }
 0x1b5   :  { %v999_v40 = vmul.f32 %v935_v60, %v3939_v29  ;;  %v1000_v56 = vmul.f32 %v936_v54, %v3939_v29  ;;  %v1063_v28 = vmul.f32 %v3623_v31, %v995_v16  ;;  %v1127_v22 = vadd.f32 %v3649_v20, %v1059_v57  ;;  %1187 = vst.msk [vmem:[%s4672_s13 + $0x20] sm:$0xff] %vm546_vm2, %v1123_v14  ;;  %v4790_v54 = vld [vmem:[#allocation28_spill] sm:$0xff] }
 0x1b6   :  { %v1001_v61 = vmul.f32 %v937_v58, %v3939_v29  ;;  %v1064_v26 = vmul.f32 %v3623_v31, %v996_v30  ;;  %v1065_v23 = vmul.f32 %v3623_v31, %v997_v2  ;;  %v1128_v5 = vadd.f32 %v3649_v20, %v1060_v18  ;;  %1188 = vst.msk [vmem:[%s4672_s13 + $0x28] sm:$0xff] %vm546_vm2, %v1124_v49  ;;  %v4793_v30 = vld [vmem:[#allocation31_spill] sm:$0xff] }
 0x1b7   :  { %v1129_v38 = vadd.f32 %v3649_v20, %v1061_v19  ;;  %1189 = vst.msk [vmem:[%s4672_s13 + $0x30] sm:$0xff] %vm546_vm2, %v1125_v44  ;;  %v1432_v33 = vadd.f32 %v4042_v6, %v1431_v4  ;;  %v1434_v11 = vadd.f32 %v4042_v6, %v1433_v32  ;;  %v1002_v50 = vmul.f32 %v938_v52, %v3939_v29  ;;  %v4795_v44 = vld [vmem:[#allocation34_spill] sm:$0xff] }
 0x1b8   :  { %v1003_v25 = vmul.f32 %v939_v43, %v3939_v29  ;;  %v1066_v51 = vmul.f32 %v3623_v31, %v998_v12  ;;  %v1130_v53 = vadd.f32 %v3649_v20, %v1062_v46  ;;  %1190 = vst.msk [vmem:[%s4672_s13 + $0x38] sm:$0xff] %vm546_vm2, %v1126_v10  ;;  %v1067_v1 = vmul.f32 %v3623_v31, %v999_v40 }
 0x1b9   :  { %v1131_v0 = vadd.f32 %v3649_v20, %v1063_v28  ;;  %1191 = vst.msk [vmem:[%s4672_s13 + $0x40] sm:$0xff] %vm546_vm2, %v1127_v22  ;;  %v1461_v4 = vmax.f32 %v1432_v33, 0.0  ;;  %v1462_v60 = vmax.f32 %v1434_v11, 0.0  ;;  %v945_v9 = vsub.f32 %v4790_v54, %v3881_v42 }
 0x1ba   :  { %v1004_v3 = vmul.f32 %v940_v37, %v3939_v29  ;;  %v1068_v58 = vmul.f32 %v3623_v31, %v1000_v56  ;;  %v1132_v52 = vadd.f32 %v3649_v20, %v1064_v26  ;;  %1192 = vst.msk [vmem:[%s4672_s13 + $0x48] sm:$0xff] %vm546_vm2, %v1128_v5  ;;  %v1005_v35 = vmul.f32 %v941_v39, %v3939_v29 }
 0x1bb   :  { %v1069_v43 = vmul.f32 %v3623_v31, %v1001_v61  ;;  %v1133_v45 = vadd.f32 %v3649_v20, %v1065_v23  ;;  %1193 = vst.msk [vmem:[%s4672_s13 + $0x50] sm:$0xff] %vm546_vm2, %v1129_v38  ;;  %v1473_v62 = vpack.c.bf16 %v1462_v60, %v1461_v4  ;;  %v946_v7 = vsub.f32 %v4791_v17, %v3881_v42 }
 0x1bc   :  { %v1006_v13 = vmul.f32 %v942_v27, %v3939_v29  ;;  %v1070_v15 = vmul.f32 %v3623_v31, %v1002_v50  ;;  %v1134_v63 = vadd.f32 %v3649_v20, %v1066_v51  ;;  %1194 = vst.msk [vmem:[%s4672_s13 + $0x58] sm:$0xff] %vm546_vm2, %v1130_v53  ;;  %v1007_v37 = vmul.f32 %v943_v47, %v3939_v29 }
 0x1bd   :  { %v1071_v24 = vmul.f32 %v3623_v31, %v1003_v25  ;;  %v1135_v59 = vadd.f32 %v3649_v20, %v1067_v1  ;;  %1195 = vst.msk [vmem:[%s4672_s13 + $0x60] sm:$0xff] %vm546_vm2, %v1131_v0  ;;  %2422 = vmatmul.msk.bf16.vlgmr.msrb.gmra.mxu3 %vm546_vm2, %v1473_v62  ;;  %v947_v39 = vsub.f32 %v4792_v34, %v3881_v42 }
 0x1be   :  { %v1008_v16 = vmul.f32 %v944_v36, %v3939_v29  ;;  %v1072_v57 = vmul.f32 %v3623_v31, %v1004_v3  ;;  %v1136_v14 = vadd.f32 %v3649_v20, %v1068_v58  ;;  %1196 = vst.msk [vmem:[%s4672_s13 + $0x68] sm:$0xff] %vm546_vm2, %v1132_v52  ;;  %v948_v2 = vsub.f32 %v4793_v30, %v3881_v42 }
 0x1bf   :  { %v1009_v18 = vmul.f32 %v945_v9, %v3939_v29  ;;  %v1073_v49 = vmul.f32 %v3623_v31, %v1005_v35  ;;  %v1137_v32 = vadd.f32 %v3649_v20, %v1069_v43  ;;  %1197 = vst.msk [vmem:[%s4672_s13 + $0x70] sm:$0xff] %vm546_vm2, %v1133_v45  ;;  %v949_v27 = vsub.f32 %v4794_v21, %v3881_v42 }
 0x1c0   :  { %v1010_v8 = vmul.f32 %v946_v7, %v3939_v29  ;;  %v1074_v47 = vmul.f32 %v3623_v31, %v1006_v13  ;;  %v1138_v19 = vadd.f32 %v3649_v20, %v1070_v15  ;;  %1198 = vst.msk [vmem:[%s4672_s13 + $0x78] sm:$0xff] %vm546_vm2, %v1134_v63  ;;  %v950_v48 = vsub.f32 %v4795_v44, %v3881_v42  ;;  %v1438_v42 = vpop.f32.mrf.mxu3 }
 0x1c1   :  { %v1011_v55 = vmul.f32 %v947_v39, %v3939_v29  ;;  %v1075_v36 = vmul.f32 %v3623_v31, %v1007_v37  ;;  %v1139_v12 = vadd.f32 %v3649_v20, %v1071_v24  ;;  %1199 = vst.msk [vmem:[%s4672_s13 + $0x80] sm:$0xff] %vm546_vm2, %v1135_v59  ;;  %v1012_v46 = vmul.f32 %v948_v2, %v3939_v29 }
 0x1c2   :  { %v1013_v10 = vmul.f32 %v949_v27, %v3939_v29  ;;  %v1076_v40 = vmul.f32 %v3623_v31, %v1008_v16  ;;  %v1140_v56 = vadd.f32 %v3649_v20, %v1072_v57  ;;  %1200 = vst.msk [vmem:[%s4672_s13 + $0x88] sm:$0xff] %vm546_vm2, %v1136_v14  ;;  %v1077_v28 = vmul.f32 %v3623_v31, %v1009_v18 }
 0x1c3   :  { %v1141_v22 = vadd.f32 %v3649_v20, %v1073_v49  ;;  %1201 = vst.msk [vmem:[%s4672_s13 + $0x90] sm:$0xff] %vm546_vm2, %v1137_v32  ;;  %v1437_v61 = vadd.f32 %v4042_v6, %v1436_v41  ;;  %v1439_v26 = vadd.f32 %v4042_v6, %v1438_v42  ;;  %v1014_v23 = vmul.f32 %v950_v48, %v3939_v29 }
 0x1c4   :  { %v1078_v5 = vmul.f32 %v3623_v31, %v1010_v8  ;;  %v1142_v38 = vadd.f32 %v3649_v20, %v1074_v47  ;;  %1202 = vst.msk [vmem:[%s4672_s13 + $0x98] sm:$0xff] %vm546_vm2, %v1138_v19  ;;  %v1079_v33 = vmul.f32 %v3623_v31, %v1011_v55  ;;  %v1143_v11 = vadd.f32 %v3649_v20, %v1075_v36  ;;  %v1556_v8 = vld [vmem:[%s4674_s2] sm:$0xff]  ;;  %v1557_v55 = vld [vmem:[%s4674_s2 + $0x8] sm:$0xff] }
 0x1c5   :  { %1203 = vst.msk [vmem:[%s4672_s13 + $0xa0] sm:$0xff] %vm546_vm2, %v1139_v12  ;;  %v1464_v50 = vmax.f32 %v1439_v26, 0.0  ;;  %v1080_v29 = vmul.f32 %v3623_v31, %v1012_v46  ;;  %v1144_v25 = vadd.f32 %v3649_v20, %v1076_v40  ;;  %v1081_v51 = vmul.f32 %v3623_v31, %v1013_v10 }
 0x1c6   :  { %1204 = vst.msk [vmem:[%s4672_s13 + $0xa8] sm:$0xff] %vm546_vm2, %v1140_v56  ;;  %v1145_v53 = vadd.f32 %v3649_v20, %v1077_v28  ;;  %v1463_v1 = vmax.f32 %v1437_v61, 0.0  ;;  %v1082_v0 = vmul.f32 %v3623_v31, %v1014_v23  ;;  %v1146_v4 = vadd.f32 %v3649_v20, %v1078_v5  ;;  %v1558_v56 = vld [vmem:[%s4674_s2 + $0x10] sm:$0xff] }
 0x1c7   :  { %1205 = vst.msk [vmem:[%s4672_s13 + $0xb0] sm:$0xff] %vm546_vm2, %v1141_v22  ;;  %v1147_v60 = vadd.f32 %v3649_v20, %v1079_v33  ;;  %v1148_v9 = vadd.f32 %v3649_v20, %v1080_v29  ;;  %v1149_v3 = vadd.f32 %v3649_v20, %v1081_v51  ;;  %v1568_v47 = vmax.f32 %v1556_v8, 0.0  ;;  %v1559_v51 = vld [vmem:[%s4674_s2 + $0x18] sm:$0xff] }
 0x1c8   :  { %1206 = vst.msk [vmem:[%s4672_s13 + $0xb8] sm:$0xff] %vm546_vm2, %v1142_v38  ;;  %v1474_v54 = vpack.c.bf16 %v1464_v50, %v1463_v1  ;;  %v1441_v31 = vpop.f32.mrf.mxu3  ;;  %v1150_v58 = vadd.f32 %v3649_v20, %v1082_v0  ;;  %v1569_v36 = vmax.f32 %v1557_v55, 0.0  ;;  %v1570_v28 = vmax.f32 %v1558_v56, 0.0 }
 0x1c9   :  { %1207 = vst.msk [vmem:[%s4672_s13 + $0xc0] sm:$0xff] %vm546_vm2, %v1143_v11  ;;  %v1442_v52 = vadd.f32 %v4042_v6, %v1441_v31  ;;  %v1580_v19 = vmin.f32 %v1568_v47, 1.0 }
 0x1ca   :  { %1208 = vst.msk [vmem:[%s4672_s13 + $0xc8] sm:$0xff] %vm546_vm2, %v1144_v25  ;;  %v4264_v26 = vmin.f32 %v1570_v28, 1.0 }
 0x1cb   :  { %1209 = vst.msk [vmem:[%s4672_s13 + $0xd0] sm:$0xff] %vm546_vm2, %v1145_v53  ;;  %v1465_v43 = vmax.f32 %v1442_v52, 0.0  ;;  %v1604_v44 = vsub.f32 1.0, %v1580_v19  ;;  %v1592_v33 = vmax.f32 %v1580_v19, 1e-05 }
 0x1cc   :  { %1210 = vst.msk [vmem:[%s4672_s13 + $0xd8] sm:$0xff] %vm546_vm2, %v1146_v4  ;;  %v1606_v38 = vsub.f32 1.0, %v4264_v26 }
 0x1cd   :  { %1211 = vst.msk [vmem:[%s4672_s13 + $0xe0] sm:$0xff] %vm546_vm2, %v1147_v60  ;;  %2423 = vmatmul.msk.bf16.gmra.mxu3 %vm546_vm2, %v1474_v54  ;;  %v1616_v48 = vmax.f32 %v1604_v44, 1e-05  ;;  %v1571_v60 = vmax.f32 %v1559_v51, 0.0 }
 0x1ce   :  { %1212 = vst.msk [vmem:[%s4672_s13 + $0xe8] sm:$0xff] %vm546_vm2, %v1148_v9  ;;  %v1618_v50 = vmax.f32 %v1606_v38, 1e-05 }
 0x1cf   :  { %1213 = vst.msk [vmem:[%s4672_s13 + $0xf0] sm:$0xff] %vm546_vm2, %v1149_v3  ;;  %2498 = vrcp.f32 %v1616_v48  ;;  %vm1633_vm9 = vweird.f32 %v1616_v48  ;;  %v1639_v42 = vand.u32 2147483648, %v1616_v48  ;;  %v1637_v61 = vand.u32 2147483647, %v1616_v48 }
 0x1d0   :  { %1214 = vst.msk [vmem:[%s4672_s13 + $0xf8] sm:$0xff] %vm546_vm2, %v1150_v58  ;;  %v1443_v20 = vpop.f32.mrf.mxu3  ;;  %v4270_v31 = vmin.f32 %v1571_v60, 1.0  ;;  %vm1663_vm1 = vweird.f32 %v1618_v50 }
 0x1d1   :  { %v1444_v41 = vadd.f32 %v4042_v6, %v1443_v20  ;;  %v1640_v5 = vor.u32 1.1754944e-38, %v1639_v42  ;;  %vm1638_vm12 = vcmp.eq.f32.partialorder %v1637_v61, 8.507059e+37 }
 0x1d3   :  { %v1466_v35 = vmax.f32 %v1444_v41, 0.0  ;;  %v1607_v41 = vsub.f32 1.0, %v4270_v31 }
 0x1d5   :  { %v1475_v45 = vpack.c.bf16 %v1466_v35, %v1465_v43  ;;  %v2499_v46 = vpop.eup %2498  ;;  %v1560_v43 = vld [vmem:[%s4674_s2 + $0x20] sm:$0xff] }
 0x1d6   :  { %v1629_v10 = vmul.f32 %v2499_v46, %v1616_v48  ;;  %vm1634_vm10 = vweird.f32 %v2499_v46 }
 0x1d7   :  { %vm1635_vm11 = vmor %vm1633_vm9, %vm1634_vm10 }
 0x1d8   :  { %v1446_v62 = vpop.f32.mrf.mxu3  ;;  %v1630_v22 = vsub.f32 1.0, %v1629_v10 }
 0x1d9   :  { %v1447_v7 = vadd.f32 %v4042_v6, %v1446_v62 }
 0x1da   :  { %v1631_v23 = vmul.f32 %v2499_v46, %v1630_v22 }
 0x1db   :  { %v1467_v63 = vmax.f32 %v1447_v7, 0.0 }
 0x1dc   :  { %v1632_v11 = vadd.f32 %v2499_v46, %v1631_v23 }
 0x1dd   :  { %2424 = vmatmul.msk.bf16.gmra.mxu3 %vm546_vm2, %v1475_v45 }
 0x1de   :  { %v1636_v25 = vsel %vm1635_vm11, %v2499_v46, %v1632_v11 }
 0x1df   :  { %v1641_v53 = vsel %vm1638_vm12, %v1640_v5, %v1636_v25 }
 0x1e0   :  { %v1448_v17 = vpop.f32.mrf.mxu3  ;;  %v1642_v0 = vmul.f32 %v1641_v53, %v1592_v33  ;;  %v1595_v33 = vmax.f32 %v4270_v31, 1e-05 }
 0x1e1   :  { %v1449_v13 = vadd.f32 %v4042_v6, %v1448_v17  ;;  %v1619_v17 = vmax.f32 %v1607_v41, 1e-05 }
 0x1e3   :  { %v1468_v15 = vmax.f32 %v1449_v13, 0.0  ;;  %vm1678_vm5 = vweird.f32 %v1619_v17  ;;  %v1682_v56 = vand.u32 2147483647, %v1619_v17 }
 0x1e5   :  { %v1476_v37 = vpack.c.bf16 %v1468_v15, %v1467_v63  ;;  %v1667_v15 = vand.u32 2147483647, %v1618_v50  ;;  %v1669_v63 = vand.u32 2147483648, %v1618_v50  ;;  %vm1683_vm8 = vcmp.eq.f32.partialorder %v1682_v56, 8.507059e+37 }
 0x1e7   :  { %vm1668_vm4 = vcmp.eq.f32.partialorder %v1667_v15, 8.507059e+37 }
 0x1e8   :  { %v1451_v24 = vpop.f32.mrf.mxu3 }
 0x1e9   :  { %v1452_v34 = vadd.f32 %v4042_v6, %v1451_v24  ;;  %v4279_v24 = vld [vmem:[%s4673_s12] ss:$0 sm:$0xff] }
 0x1eb   :  { %v1469_v57 = vmax.f32 %v1452_v34, 0.0 }
 0x1ed   :  { %2425 = vmatmul.msk.bf16.gmra.mxu3 %vm546_vm2, %v1476_v37  ;;  %v1572_v37 = vmax.f32 %v1560_v43, 0.0 }
 0x1f0   :  { %v1453_v59 = vpop.f32.mrf.mxu3 }
 0x1f1   :  { %v1454_v39 = vadd.f32 %v4042_v6, %v1453_v59 }
 0x1f3   :  { %v1470_v16 = vmax.f32 %v1454_v39, 0.0  ;;  %v4281_v39 = vmin.f32 %v1572_v37, 1.0 }
 0x1f5   :  { %v1477_v14 = vpack.c.bf16 %v1470_v16, %v1469_v57 }
 0x1fd   :  { %2426 = vmatmul.msk.bf16.gmra.mxu3 %vm546_vm2, %v1477_v14 }
 0x20a   :  { %v1456_v30 = vpop.f32.mrf.mxu3 }
 0x20b   :  { %v1457_v2 = vadd.f32 %v4042_v6, %v1456_v30  ;;  %v1594_v30 = vmax.f32 %v4264_v26, 1e-05 }
 0x20d   :  { %v1471_v32 = vmax.f32 %v1457_v2, 0.0  ;;  %v1670_v2 = vor.u32 1.1754944e-38, %v1669_v63 }
 0x212   :  { %v1458_v18 = vpop.f32.mrf.mxu3 }
 0x213   :  { %v1459_v49 = vadd.f32 %v4042_v6, %v1458_v18  ;;  %v1581_v6 = vmin.f32 %v1569_v36, 1.0  ;;  %v1684_v36 = vand.u32 2147483648, %v1619_v17 }
 0x215   :  { %v1472_v21 = vmax.f32 %v1459_v49, 0.0  ;;  %v1605_v12 = vsub.f32 1.0, %v1581_v6  ;;  %v1593_v20 = vmax.f32 %v1581_v6, 1e-05  ;;  %v1685_v5 = vor.u32 1.1754944e-38, %v1684_v36 }
 0x217   :  { %v1478_v27 = vpack.c.bf16 %v1472_v21, %v1471_v32  ;;  %v1617_v40 = vmax.f32 %v1605_v12, 1e-05  ;;  %v1608_v32 = vsub.f32 1.0, %v4281_v39  ;;  %v1561_v21 = vld [vmem:[%s4674_s2 + $0x28] sm:$0xff] }
 0x218   :  { %v1573_v44 = vmax.f32 %v1561_v21, 0.0 }
 0x219   :  { %2427 = vmatmul.msk.bf16.gmra.mxu3 %vm546_vm2, %v1478_v27  ;;  %2500 = vrcp.f32 %v1617_v40  ;;  %v1654_v4 = vand.u32 2147483648, %v1617_v40  ;;  %vm1648_vm13 = vweird.f32 %v1617_v40  ;;  %v1652_v9 = vand.u32 2147483647, %v1617_v40 }
 0x21a   :  { %2502 = vrcp.f32 %v1618_v50  ;;  %v1620_v19 = vmax.f32 %v1608_v32, 1e-05  ;;  %v4290_v10 = vmin.f32 %v1573_v44, 1.0 }
 0x21b   :  { %2504 = vlog2.f32 %v1642_v0  ;;  %v1655_v58 = vor.u32 1.1754944e-38, %v1654_v4  ;;  %vm1653_vm0 = vcmp.eq.f32.partialorder %v1652_v9, 8.507059e+37 }
 0x21c   :  { %2506 = vrcp.f32 %v1619_v17  ;;  %v1609_v28 = vsub.f32 1.0, %v4290_v10  ;;  %vm1693_vm9 = vweird.f32 %v1620_v19  ;;  %v1699_v9 = vand.u32 2147483648, %v1620_v19 }
 0x21e   :  { %v4298_v38 = vmax.f32 %v1609_v28, 1e-05 }
 0x21f   :  { %v2501_v29 = vpop.eup %2500 }
 0x220   :  { %v1644_v1 = vmul.f32 %v2501_v29, %v1617_v40  ;;  %vm1649_vm14 = vweird.f32 %v2501_v29  ;;  %v2503_v35 = vpop.eup %2502 }
 0x221   :  { %vm1650_vm15 = vmor %vm1648_vm13, %vm1649_vm14  ;;  %v1659_v62 = vmul.f32 %v2503_v35, %v1618_v50  ;;  %v2505_v7 = vpop.eup %2504  ;;  %vm1664_vm2 = vweird.f32 %v2503_v35  ;;  %v1562_v50 = vld [vmem:[%s4674_s2 + $0x30] sm:$0xff]  ;;  %vm1708_vm13 = vweird.f32 %v4298_v38 }
 0x222   :  { %v1645_v54 = vsub.f32 1.0, %v1644_v1  ;;  %v1809_v16 = vmul.f32 0.6931472, %v2505_v7  ;;  %vm1665_vm3 = vmor %vm1663_vm1, %vm1664_vm2  ;;  %v2507_v27 = vpop.eup %2506  ;;  %v1574_v1 = vmax.f32 %v1562_v50, 0.0  ;;  %v1700_v7 = vor.u32 1.1754944e-38, %v1699_v9 }
 0x223   :  { %v1660_v34 = vsub.f32 1.0, %v1659_v62  ;;  %v1674_v55 = vmul.f32 %v2507_v27, %v1619_v17  ;;  %vm1679_vm6 = vweird.f32 %v2507_v27  ;;  %v1564_v17 = vld [vmem:[%s4674_s2 + $0x40] sm:$0xff] }
 0x224   :  { %v1646_v3 = vmul.f32 %v2501_v29, %v1645_v54  ;;  %vm4294_vm7 = vmor %vm1678_vm5, %vm1679_vm6  ;;  %v1697_v54 = vand.u32 2147483647, %v1620_v19  ;;  %v4310_v43 = vmin.f32 %v1574_v1, 1.0 }
 0x225   :  { %v1661_v57 = vmul.f32 %v2503_v35, %v1660_v34  ;;  %v1675_v40 = vsub.f32 1.0, %v1674_v55 }
 0x226   :  { %v1647_v52 = vadd.f32 %v2501_v29, %v1646_v3  ;;  %vm1698_vm12 = vcmp.eq.f32.partialorder %v1697_v54, 8.507059e+37  ;;  %v1598_v1 = vmax.f32 %v4310_v43, 1e-05 }
 0x227   :  { %v1662_v49 = vadd.f32 %v2503_v35, %v1661_v57  ;;  %v1676_v61 = vmul.f32 %v2507_v27, %v1675_v40  ;;  %v1714_v57 = vand.u32 2147483648, %v4298_v38 }
 0x228   :  { %v1651_v45 = vsel %vm1650_vm15, %v2501_v29, %v1647_v52 }
 0x229   :  { %v1656_v13 = vsel %vm1653_vm0, %v1655_v58, %v1651_v45  ;;  %v1666_v47 = vsel %vm1665_vm3, %v2503_v35, %v1662_v49  ;;  %v1677_v11 = vadd.f32 %v2507_v27, %v1676_v61  ;;  %v1715_v55 = vor.u32 1.1754944e-38, %v1714_v57 }
 0x22a   :  { %v1657_v59 = vmul.f32 %v1656_v13, %v1593_v20  ;;  %v1671_v48 = vsel %vm1668_vm4, %v1670_v2, %v1666_v47  ;;  %v1596_v13 = vmax.f32 %v4281_v39, 1e-05 }
 0x22b   :  { %v1672_v46 = vmul.f32 %v1671_v48, %v1594_v30  ;;  %v1681_v51 = vsel %vm4294_vm7, %v2507_v27, %v1677_v11 }
 0x22c   :  { %2508 = vlog2.f32 %v1657_v59  ;;  %v1686_v60 = vsel %vm1683_vm8, %v1685_v5, %v1681_v51  ;;  %v1712_v59 = vand.u32 2147483647, %v4298_v38 }
 0x22d   :  { %2510 = vrcp.f32 %v1620_v19  ;;  %v1687_v58 = vmul.f32 %v1686_v60, %v1595_v33 }
 0x22e   :  { %vm1713_vm0 = vcmp.eq.f32.partialorder %v1712_v59, 8.507059e+37 }
 0x232   :  { %v2509_v6 = vpop.eup %2508 }
 0x233   :  { %v1811_v42 = vmul.f32 0.6931472, %v2509_v6  ;;  %v2511_v29 = vpop.eup %2510  ;;  %v1563_v6 = vld [vmem:[%s4674_s2 + $0x38] sm:$0xff] }
 0x234   :  { %v1689_v53 = vmul.f32 %v2511_v29, %v1620_v19  ;;  %vm1694_vm10 = vweird.f32 %v2511_v29  ;;  %v1575_v28 = vmax.f32 %v1563_v6, 0.0 }
 0x235   :  { %vm4314_vm11 = vmor %vm1693_vm9, %vm1694_vm10 }
 0x236   :  { %v1690_v20 = vsub.f32 1.0, %v1689_v53 }
 0x238   :  { %v1691_v35 = vmul.f32 %v2511_v29, %v1690_v20 }
 0x23a   :  { %v1692_v15 = vadd.f32 %v2511_v29, %v1691_v35 }
 0x23c   :  { %v1696_v34 = vsel %vm4314_vm11, %v2511_v29, %v1692_v15 }
 0x23d   :  { %v1701_v2 = vsel %vm1698_vm12, %v1700_v7, %v1696_v34 }
 0x23e   :  { %v1702_v27 = vmul.f32 %v1701_v2, %v1596_v13 }
 0x240   :  { %v1526_v14 = vpop.f32.mrf.mxu3 }
 0x241   :  { %v1527_v18 = vadd.f32 %v4279_v24, %v1526_v14  ;;  %v1610_v14 = vsub.f32 1.0, %v4310_v43 }
 0x243   :  { %v1832_v8 = vadd.f32 %v1809_v16, %v1527_v18  ;;  %v4339_v36 = vmax.f32 %v1610_v14, 1e-05  ;;  %v1576_v14 = vmax.f32 %v1564_v17, 0.0 }
 0x245   :  { %v2428_v12 = vmul.f32 -1.442695, %v1832_v8  ;;  %v1597_v8 = vmax.f32 %v4290_v10, 1e-05  ;;  %v1727_v9 = vand.u32 2147483647, %v4339_v36  ;;  %vm1723_vm8 = vweird.f32 %v4339_v36 }
 0x247   :  { %2512 = vpow2.f32 %v2428_v12  ;;  %vm4382_vm10 = vcmp.eq.f32.partialorder %v1727_v9, 8.507059e+37 }
 0x248   :  { %v1528_v22 = vpop.f32.mrf.mxu3  ;;  %2514 = vlog2.f32 %v1672_v46 }
 0x249   :  { %v1529_v26 = vadd.f32 %v4279_v24, %v1528_v22  ;;  %2516 = vrcp.f32 %v4298_v38 }
 0x24b   :  { %v1833_v25 = vadd.f32 %v1811_v42, %v1529_v26 }
 0x24d   :  { %v2513_v0 = vpop.eup %2512  ;;  %v2429_v4 = vmul.f32 -1.442695, %v1833_v25 }
 0x24e   :  { %v2515_v31 = vpop.eup %2514  ;;  %v4307_v3 = vadd.f32 1.0, %v2513_v0  ;;  %v4362_v0 = vmin.f32 %v1575_v28, 1.0  ;;  %v1566_v28 = vld [vmem:[%s4674_s2 + $0x50] sm:$0xff] }
 0x24f   :  { %2518 = vpow2.f32 %v2429_v4  ;;  %v1813_v52 = vmul.f32 0.6931472, %v2515_v31  ;;  %v2517_v45 = vpop.eup %2516 }
 0x250   :  { %2520 = vrcp.f32 %v4307_v3  ;;  %v1531_v41 = vpop.f32.mrf.mxu3  ;;  %v1704_v63 = vmul.f32 %v2517_v45, %v4298_v38  ;;  %vm1709_vm14 = vweird.f32 %v2517_v45  ;;  %v1901_v18 = vand.u32 2147483647, %v4307_v3 }
 0x251   :  { %v1532_v62 = vadd.f32 %v4279_v24, %v1531_v41  ;;  %2522 = vlog2.f32 %v1687_v58  ;;  %v1903_v49 = vand.u32 2147483648, %v4307_v3  ;;  %vm4335_vm15 = vmor %vm1708_vm13, %vm1709_vm14  ;;  %vm1897_vm1 = vweird.f32 %v4307_v3 }
 0x252   :  { %v1705_v16 = vsub.f32 1.0, %v1704_v63  ;;  %vm4350_vm3 = vcmp.eq.f32.partialorder %v1901_v18, 8.507059e+37  ;;  %v1611_v13 = vsub.f32 1.0, %v4362_v0 }
 0x253   :  { %v1834_v37 = vadd.f32 %v1813_v52, %v1532_v62  ;;  %v1904_v5 = vor.u32 1.1754944e-38, %v1903_v49  ;;  %v1729_v52 = vand.u32 2147483648, %v4339_v36 }
 0x254   :  { %v1706_v47 = vmul.f32 %v2517_v45, %v1705_v16  ;;  %v4386_v57 = vmax.f32 %v1611_v13, 1e-05 }
 0x255   :  { %v2519_v30 = vpop.eup %2518  ;;  %v2430_v39 = vmul.f32 -1.442695, %v1834_v37  ;;  %v1730_v16 = vor.u32 1.1754944e-38, %v1729_v52 }
 0x256   :  { %v2521_v32 = vpop.eup %2520  ;;  %v4328_v21 = vadd.f32 1.0, %v2519_v30  ;;  %v1707_v10 = vadd.f32 %v2517_v45, %v1706_v47 }
 0x257   :  { %v2523_v19 = vpop.eup %2522  ;;  %2524 = vpow2.f32 %v2430_v39  ;;  %v1893_v44 = vmul.f32 %v2521_v32, %v4307_v3  ;;  %vm1898_vm2 = vweird.f32 %v2521_v32 }
 0x258   :  { %2526 = vrcp.f32 %v4328_v21  ;;  %v1533_v12 = vpop.f32.mrf.mxu3  ;;  %v1815_v46 = vmul.f32 0.6931472, %v2523_v19  ;;  %v1711_v42 = vsel %vm4335_vm15, %v2517_v45, %v1707_v10  ;;  %vm1912_vm4 = vweird.f32 %v4328_v21  ;;  %vm1899_vm5 = vmor %vm1897_vm1, %vm1898_vm2 }
 0x259   :  { %v1534_v40 = vadd.f32 %v4279_v24, %v1533_v12  ;;  %2528 = vlog2.f32 %v1702_v27  ;;  %v1894_v56 = vsub.f32 1.0, %v1893_v44  ;;  %v1716_v26 = vsel %vm1713_vm0, %v1715_v55, %v1711_v42 }
 0x25a   :  { %2530 = vrcp.f32 %v4339_v36  ;;  %v1717_v38 = vmul.f32 %v1716_v26, %v1597_v8  ;;  %v1916_v29 = vand.u32 2147483647, %v4328_v21  ;;  %v1918_v25 = vand.u32 2147483648, %v4328_v21 }
 0x25b   :  { %v1835_v22 = vadd.f32 %v1815_v46, %v1534_v40  ;;  %v1895_v61 = vmul.f32 %v2521_v32, %v1894_v56  ;;  %v4413_v12 = vmin.f32 %v1576_v14, 1.0  ;;  %v1565_v56 = vld [vmem:[%s4674_s2 + $0x48] sm:$0xff]  ;;  %vm1738_vm15 = vweird.f32 %v4386_v57 }
 0x25c   :  { %2532 = vlog2.f32 %v1717_v38  ;;  %vm4372_vm6 = vcmp.eq.f32.partialorder %v1916_v29, 8.507059e+37  ;;  %v1919_v7 = vor.u32 1.1754944e-38, %v1918_v25  ;;  %v1742_v38 = vand.u32 2147483647, %v4386_v57 }
 0x25d   :  { %v2525_v33 = vpop.eup %2524  ;;  %v2431_v11 = vmul.f32 -1.442695, %v1835_v22  ;;  %v1896_v50 = vadd.f32 %v2521_v32, %v1895_v61 }
 0x25e   :  { %v2527_v51 = vpop.eup %2526  ;;  %v4357_v53 = vadd.f32 1.0, %v2525_v33  ;;  %v1744_v33 = vand.u32 2147483648, %v4386_v57 }
 0x25f   :  { %v2529_v4 = vpop.eup %2528  ;;  %2534 = vpow2.f32 %v2431_v11  ;;  %v1900_v60 = vsel %vm1899_vm5, %v2521_v32, %v1896_v50  ;;  %v1908_v54 = vmul.f32 %v2527_v51, %v4328_v21  ;;  %vm1913_vm7 = vweird.f32 %v2527_v51 }
 0x260   :  { %v2531_v31 = vpop.eup %2530  ;;  %2536 = vrcp.f32 %v4357_v53  ;;  %v1536_v58 = vpop.f32.mrf.mxu3  ;;  %v1817_v20 = vmul.f32 0.6931472, %v2529_v4  ;;  %v1905_v3 = vsel %vm4350_vm3, %v1904_v5, %v1900_v60  ;;  %vm4391_vm11 = vmor %vm1912_vm4, %vm1913_vm7  ;;  %v1931_v32 = vand.u32 2147483647, %v4357_v53 }
 0x261   :  { %v1537_v41 = vadd.f32 %v4279_v24, %v1536_v58  ;;  %2132 = vrot.lane.b32.xlu0 %v1905_v3, %s2596_s28  ;;  %v1909_v35 = vsub.f32 1.0, %v1908_v54  ;;  %v1719_v62 = vmul.f32 %v2531_v31, %v4339_v36  ;;  %vm1724_vm9 = vweird.f32 %v2531_v31 }
 0x262   :  { %v2533_v59 = vpop.eup %2532  ;;  %vm4401_vm12 = vmor %vm1723_vm8, %vm1724_vm9  ;;  %v1933_v21 = vand.u32 2147483648, %v4357_v53  ;;  %2538 = vrcp.f32 %v4386_v57  ;;  %vm1927_vm13 = vweird.f32 %v4357_v53  ;;  %vm4425_vm14 = vcmp.eq.f32.partialorder %v1931_v32, 8.507059e+37 }
 0x263   :  { %v1836_v15 = vadd.f32 %v1817_v20, %v1537_v41  ;;  %v1910_v63 = vmul.f32 %v2527_v51, %v1909_v35  ;;  %v1720_v37 = vsub.f32 1.0, %v1719_v62  ;;  %v1819_v47 = vmul.f32 0.6931472, %v2533_v59 }
 0x264   :  { %v1934_v22 = vor.u32 1.1754944e-38, %v1933_v21  ;;  %v1612_v11 = vsub.f32 1.0, %v4413_v12  ;;  %v1577_v50 = vmax.f32 %v1565_v56, 0.0  ;;  %v1599_v62 = vmax.f32 %v4362_v0, 1e-05 }
 0x265   :  { %v2535_v30 = vpop.eup %2534  ;;  %v2432_v39 = vmul.f32 -1.442695, %v1836_v15  ;;  %v1911_v2 = vadd.f32 %v2527_v51, %v1910_v63  ;;  %v1721_v49 = vmul.f32 %v2531_v31, %v1720_v37  ;;  %vm4461_vm4 = vcmp.eq.f32.partialorder %v1742_v38, 8.507059e+37 }
 0x266   :  { %v2537_v27 = vpop.eup %2536  ;;  %v4396_v8 = vadd.f32 1.0, %v2535_v30  ;;  %v1745_v13 = vor.u32 1.1754944e-38, %v1744_v33 }
 0x267   :  { %2540 = vpow2.f32 %v2432_v39  ;;  %v1915_v44 = vsel %vm4391_vm11, %v2527_v51, %v1911_v2  ;;  %v1722_v48 = vadd.f32 %v2531_v31, %v1721_v49  ;;  %v1923_v55 = vmul.f32 %v2537_v27, %v4357_v53 }
 0x268   :  { %2542 = vrcp.f32 %v4396_v8  ;;  %v1538_v6 = vpop.f32.mrf.mxu3  ;;  %v1920_v36 = vsel %vm4372_vm6, %v1919_v7, %v1915_v44  ;;  %vm1928_vm0 = vweird.f32 %v2537_v27  ;;  %v2539_v5 = vpop.eup %2538  ;;  %v1946_v43 = vand.u32 2147483647, %v4396_v8 }
 0x269   :  { %v1539_v46 = vadd.f32 %v4279_v24, %v1538_v6  ;;  %2134 = vrot.lane.b32.xlu1 %v1920_v36, %s2596_s28  ;;  %v1726_v10 = vsel %vm4401_vm12, %v2531_v31, %v1722_v48  ;;  %v1924_v40 = vsub.f32 1.0, %v1923_v55  ;;  %v1734_v4 = vmul.f32 %v2539_v5, %v4386_v57  ;;  %vm1929_vm1 = vmor %vm1927_vm13, %vm1928_vm0 }
 0x26a   :  { %v1731_v42 = vsel %vm4382_vm10, %v1730_v16, %v1726_v10  ;;  %vm1739_vm2 = vweird.f32 %v2539_v5  ;;  %v1948_v52 = vand.u32 2147483648, %v4396_v8  ;;  %v4448_v53 = vmin.f32 %v1577_v50, 1.0 }
 0x26b   :  { %v1837_v61 = vadd.f32 %v1819_v47, %v1539_v46  ;;  %v1732_v26 = vmul.f32 %v1731_v42, %v1598_v1  ;;  %v1925_v23 = vmul.f32 %v2537_v27, %v1924_v40  ;;  %v4441_v1 = vmax.f32 %v1612_v11, 1e-05  ;;  %vm4457_vm3 = vmor %vm1738_vm15, %vm1739_vm2 }
 0x26c   :  { %v1735_v31 = vsub.f32 1.0, %v1734_v4  ;;  %vm1942_vm5 = vweird.f32 %v4396_v8  ;;  %vm4466_vm7 = vcmp.eq.f32.partialorder %v1946_v43, 8.507059e+37  ;;  %v1949_v34 = vor.u32 1.1754944e-38, %v1948_v52 }
 0x26d   :  { %v2541_v29 = vpop.eup %2540  ;;  %v2433_v25 = vmul.f32 -1.442695, %v1837_v61  ;;  %2544 = vlog2.f32 %v1732_v26  ;;  %v1926_v51 = vadd.f32 %v2537_v27, %v1925_v23  ;;  %v1613_v16 = vsub.f32 1.0, %v4448_v53 }
 0x26e   :  { %v2543_v60 = vpop.eup %2542  ;;  %v4436_v54 = vadd.f32 1.0, %v2541_v29  ;;  %v1736_v41 = vmul.f32 %v2539_v5, %v1735_v31  ;;  %v1757_v39 = vand.u32 2147483647, %v4441_v1  ;;  %v1759_v2 = vand.u32 2147483648, %v4441_v1 }
 0x26f   :  { %2546 = vpow2.f32 %v2433_v25  ;;  %v1930_v9 = vsel %vm1929_vm1, %v2537_v27, %v1926_v51  ;;  %v1938_v58 = vmul.f32 %v2543_v60, %v4396_v8  ;;  %vm1943_vm6 = vweird.f32 %v2543_v60 }
 0x270   :  { %2548 = vrcp.f32 %v4436_v54  ;;  %v1541_v20 = vpop.f32.mrf.mxu3  ;;  %v1935_v3 = vsel %vm4425_vm14, %v1934_v22, %v1930_v9  ;;  %v1737_v63 = vadd.f32 %v2539_v5, %v1736_v41  ;;  %vm1944_vm8 = vmor %vm1942_vm5, %vm1943_vm6  ;;  %v1961_v47 = vand.u32 2147483647, %v4436_v54 }
 0x271   :  { %2136 = vrot.lane.b32.xlu2 %v1935_v3, %s2596_s28  ;;  %v1939_v35 = vsub.f32 1.0, %v1938_v58  ;;  %2550 = vrcp.f32 %v4441_v1  ;;  %v1542_v45 = vadd.f32 %v4279_v24, %v1541_v20  ;;  %v4483_v55 = vmax.f32 %v1613_v16, 1e-05 }
 0x272   :  { %v1741_v14 = vsel %vm4457_vm3, %v2539_v5, %v1737_v63  ;;  %v1600_v8 = vmax.f32 %v4413_v12, 1e-05  ;;  %v1963_v56 = vand.u32 2147483648, %v4436_v54  ;;  %vm1753_vm9 = vweird.f32 %v4441_v1  ;;  %v1567_v12 = vld [vmem:[%s4674_s2 + $0x58] sm:$0xff] }
 0x273   :  { %v2545_v15 = vpop.eup %2544  ;;  %v1940_v37 = vmul.f32 %v2543_v60, %v1939_v35  ;;  %v1746_v27 = vsel %vm4461_vm4, %v1745_v13, %v1741_v14  ;;  %vm1957_vm11 = vweird.f32 %v4436_v54  ;;  %vm4501_vm13 = vcmp.eq.f32.partialorder %v1757_v39, 8.507059e+37 }
 0x274   :  { %v1821_v59 = vmul.f32 0.6931472, %v2545_v15  ;;  %v1747_v21 = vmul.f32 %v1746_v27, %v1599_v62  ;;  %v1760_v23 = vor.u32 1.1754944e-38, %v1759_v2  ;;  %vm4505_vm14 = vcmp.eq.f32.partialorder %v1961_v47, 8.507059e+37 }
 0x275   :  { %v2547_v57 = vpop.eup %2546  ;;  %v1941_v30 = vadd.f32 %v2543_v60, %v1940_v37  ;;  %v1964_v50 = vor.u32 1.1754944e-38, %v1963_v56  ;;  %v1578_v29 = vmax.f32 %v1566_v28, 0.0  ;;  %vm1768_vm1 = vweird.f32 %v4483_v55 }
 0x276   :  { %v2549_v18 = vpop.eup %2548  ;;  %v4475_v49 = vadd.f32 1.0, %v2547_v57  ;;  %v1838_v32 = vadd.f32 %v1821_v59, %v1542_v45  ;;  %v1772_v4 = vand.u32 2147483647, %v4483_v55  ;;  %v1774_v9 = vand.u32 2147483648, %v4483_v55 }
 0x277   :  { %v2551_v19 = vpop.eup %2550  ;;  %v1945_v44 = vsel %vm1944_vm8, %v2543_v60, %v1941_v30  ;;  %v1953_v48 = vmul.f32 %v2549_v18, %v4436_v54  ;;  %vm1958_vm12 = vweird.f32 %v2549_v18  ;;  %v1579_v60 = vmax.f32 %v1567_v12, 0.0 }
 0x278   :  { %2552 = vrcp.f32 %v4475_v49  ;;  %v2434_v6 = vmul.f32 -1.442695, %v1838_v32  ;;  %v1543_v36 = vpop.f32.mrf.mxu3  ;;  %v1950_v46 = vsel %vm4466_vm7, %v1949_v34, %v1945_v44  ;;  %v1749_v10 = vmul.f32 %v2551_v19, %v4441_v1  ;;  %vm1959_vm0 = vmor %vm1957_vm11, %vm1958_vm12 }
 0x279   :  { %2554 = vlog2.f32 %v1747_v21  ;;  %2138 = vrot.lane.b32.xlu0 %v1950_v46, %s2596_s28  ;;  %v1954_v40 = vsub.f32 1.0, %v1953_v48  ;;  %vm1754_vm10 = vweird.f32 %v2551_v19  ;;  %v1544_v38 = vadd.f32 %v4279_v24, %v1543_v36 }
 0x27a   :  { %2556 = vpow2.f32 %v2434_v6  ;;  %v1750_v42 = vsub.f32 1.0, %v1749_v10  ;;  %vm4510_vm15 = vmor %vm1753_vm9, %vm1754_vm10  ;;  %v4520_v58 = vmin.f32 %v1578_v29, 1.0  ;;  %v1976_v41 = vand.u32 2147483647, %v4475_v49 }
 0x27b   :  { %v1955_v22 = vmul.f32 %v2549_v18, %v1954_v40  ;;  %2558 = vrcp.f32 %v4483_v55  ;;  %v1978_v7 = vand.u32 2147483648, %v4475_v49  ;;  %v4534_v59 = vmin.f32 %v1579_v60, 1.0 }
 0x27c   :  { %v1751_v61 = vmul.f32 %v2551_v19, %v1750_v42  ;;  %v1614_v34 = vsub.f32 1.0, %v4520_v58  ;;  %vm1972_vm4 = vweird.f32 %v4475_v49  ;;  %v1775_v27 = vor.u32 1.1754944e-38, %v1774_v9 }
 0x27d   :  { %v1956_v11 = vadd.f32 %v2549_v18, %v1955_v22  ;;  %v1979_v2 = vor.u32 1.1754944e-38, %v1978_v7  ;;  %vm1977_vm7 = vcmp.eq.f32.partialorder %v1976_v41, 8.507059e+37  ;;  %vm1773_vm8 = vcmp.eq.f32.partialorder %v1772_v4, 8.507059e+37 }
 0x27e   :  { %v2553_v25 = vpop.eup %2552  ;;  %v1752_v51 = vadd.f32 %v2551_v19, %v1751_v61  ;;  %v1626_v30 = vmax.f32 %v1614_v34, 1e-05  ;;  %v1602_v42 = vmax.f32 %v4520_v58, 1e-05 }
 0x27f   :  { %v2555_v43 = vpop.eup %2554  ;;  %v1960_v1 = vsel %vm1959_vm0, %v2549_v18, %v1956_v11  ;;  %v1968_v31 = vmul.f32 %v2553_v25, %v4475_v49  ;;  %vm1973_vm2 = vweird.f32 %v2553_v25  ;;  %v1615_v18 = vsub.f32 1.0, %v4534_v59 }
 0x280   :  { %v2557_v20 = vpop.eup %2556  ;;  %v1823_v3 = vmul.f32 0.6931472, %v2555_v43  ;;  %v1756_v52 = vsel %vm4510_vm15, %v2551_v19, %v1752_v51  ;;  %v1965_v54 = vsel %vm4505_vm14, %v1964_v50, %v1960_v1  ;;  %v1546_v15 = vpop.f32.mrf.mxu3  ;;  %vm1974_vm5 = vmor %vm1972_vm4, %vm1973_vm2  ;;  %v1601_v19 = vmax.f32 %v4448_v53, 1e-05 }
 0x281   :  { %v2559_v35 = vpop.eup %2558  ;;  %v4527_v45 = vadd.f32 1.0, %v2557_v20  ;;  %v1761_v62 = vsel %vm4501_vm13, %v1760_v23, %v1756_v52  ;;  %2140 = vrot.lane.b32.xlu1 %v1965_v54, %s2596_s28  ;;  %v1969_v17 = vsub.f32 1.0, %v1968_v31  ;;  %v1547_v48 = vadd.f32 %v4279_v24, %v1546_v15 }
 0x282   :  { %v1839_v13 = vadd.f32 %v1823_v3, %v1544_v38  ;;  %v1762_v63 = vmul.f32 %v1761_v62, %v1600_v8  ;;  %v1764_v37 = vmul.f32 %v2559_v35, %v4483_v55  ;;  %vm1769_vm3 = vweird.f32 %v2559_v35 }
 0x283   :  { %2560 = vrcp.f32 %v4527_v45  ;;  %v1970_v0 = vmul.f32 %v2553_v25, %v1969_v17  ;;  %vm4542_vm6 = vmor %vm1768_vm1, %vm1769_vm3  ;;  %v4549_v6 = vmax.f32 %v1615_v18, 1e-05  ;;  %v1991_v22 = vand.u32 2147483647, %v4527_v45 }
 0x284   :  { %v2435_v16 = vmul.f32 -1.442695, %v1839_v13  ;;  %2562 = vlog2.f32 %v1762_v63  ;;  %v1765_v57 = vsub.f32 1.0, %v1764_v37  ;;  %v1787_v23 = vand.u32 2147483647, %v1626_v30 }
 0x285   :  { %v1971_v14 = vadd.f32 %v2553_v25, %v1970_v0  ;;  %v1993_v5 = vand.u32 2147483648, %v4527_v45  ;;  %v1789_v50 = vand.u32 2147483648, %v1626_v30  ;;  %vm1987_vm10 = vweird.f32 %v4527_v45 }
 0x286   :  { %2564 = vpow2.f32 %v2435_v16  ;;  %v1766_v39 = vmul.f32 %v2559_v35, %v1765_v57  ;;  %vm1783_vm11 = vweird.f32 %v1626_v30  ;;  %vm1992_vm14 = vcmp.eq.f32.partialorder %v1991_v22, 8.507059e+37 }
 0x287   :  { %v1975_v47 = vsel %vm1974_vm5, %v2553_v25, %v1971_v14  ;;  %2566 = vrcp.f32 %v1626_v30  ;;  %v1994_v60 = vor.u32 1.1754944e-38, %v1993_v5  ;;  %vm4563_vm15 = vcmp.eq.f32.partialorder %v1787_v23, 8.507059e+37 }
 0x288   :  { %v1767_v49 = vadd.f32 %v2559_v35, %v1766_v39  ;;  %v1980_v21 = vsel %vm1977_vm7, %v1979_v2, %v1975_v47  ;;  %2568 = vrcp.f32 %v4549_v6  ;;  %v1548_v40 = vpop.f32.mrf.mxu3  ;;  %v1790_v20 = vor.u32 1.1754944e-38, %v1789_v50 }
 0x289   :  { %v2561_v44 = vpop.eup %2560  ;;  %2142 = vrot.lane.b32.xlu2 %v1980_v21, %s2596_s28  ;;  %v1549_v4 = vadd.f32 %v4279_v24, %v1548_v40  ;;  %v1802_v52 = vand.u32 2147483647, %v4549_v6  ;;  %v1804_v54 = vand.u32 2147483648, %v4549_v6  ;;  %vm1798_vm1 = vweird.f32 %v4549_v6 }
 0x28a   :  { %v2563_v55 = vpop.eup %2562  ;;  %v1771_v36 = vsel %vm4542_vm6, %v2559_v35, %v1767_v49  ;;  %v1983_v46 = vmul.f32 %v2561_v44, %v4527_v45  ;;  %vm1988_vm9 = vweird.f32 %v2561_v44  ;;  %v1603_v15 = vmax.f32 %v4534_v59, 1e-05 }
 0x28b   :  { %v1825_v10 = vmul.f32 0.6931472, %v2563_v55  ;;  %v1776_v8 = vsel %vm1773_vm8, %v1775_v27, %v1771_v36  ;;  %vm1989_vm13 = vmor %vm1987_vm10, %vm1988_vm9  ;;  %vm1803_vm4 = vcmp.eq.f32.partialorder %v1802_v52, 8.507059e+37  ;;  %v1805_v14 = vor.u32 1.1754944e-38, %v1804_v54  ;;  %v2085_v54 = vpop.permute.xlu0 %2084 }
 0x28c   :  { %v2565_v53 = vpop.eup %2564  ;;  %v1777_v56 = vmul.f32 %v1776_v8, %v1601_v19  ;;  %v1984_v28 = vsub.f32 1.0, %v1983_v46 }
 0x28d   :  { %v2567_v12 = vpop.eup %2566  ;;  %v4557_v61 = vadd.f32 1.0, %v2565_v53  ;;  %v1840_v26 = vadd.f32 %v1825_v10, %v1547_v48 }
 0x28e   :  { %2570 = vlog2.f32 %v1777_v56  ;;  %v1779_v38 = vmul.f32 %v2567_v12, %v1626_v30  ;;  %v1985_v33 = vmul.f32 %v2561_v44, %v1984_v28  ;;  %vm1784_vm12 = vweird.f32 %v2567_v12  ;;  %v2569_v51 = vpop.eup %2568 }
 0x28f   :  { %2572 = vrcp.f32 %v4557_v61  ;;  %v2436_v11 = vmul.f32 -1.442695, %v1840_v26  ;;  %v1794_v31 = vmul.f32 %v2569_v51, %v4549_v6  ;;  %vm4568_vm0 = vmor %vm1783_vm11, %vm1784_vm12  ;;  %vm1799_vm2 = vweird.f32 %v2569_v51 }
 0x290   :  { %v1780_v29 = vsub.f32 1.0, %v1779_v38  ;;  %v1986_v25 = vadd.f32 %v2561_v44, %v1985_v33  ;;  %vm4582_vm3 = vmor %vm1798_vm1, %vm1799_vm2  ;;  %v2006_v59 = vand.u32 2147483647, %v4557_v61  ;;  %v2008_v27 = vand.u32 2147483648, %v4557_v61 }
 0x291   :  { %2574 = vpow2.f32 %v2436_v11  ;;  %v1795_v45 = vsub.f32 1.0, %v1794_v31  ;;  %vm2002_vm6 = vweird.f32 %v4557_v61 }
 0x292   :  { %v1781_v43 = vmul.f32 %v2567_v12, %v1780_v29  ;;  %v1990_v9 = vsel %vm1989_vm13, %v2561_v44, %v1986_v25  ;;  %v2009_v48 = vor.u32 1.1754944e-38, %v2008_v27  ;;  %vm2007_vm8 = vcmp.eq.f32.partialorder %v2006_v59, 8.507059e+37  ;;  %v4594_v25 = vpop.permute.xlu2 %2092 }
 0x293   :  { %v1995_v3 = vsel %vm1992_vm14, %v1994_v60, %v1990_v9  ;;  %v1796_v63 = vmul.f32 %v2569_v51, %v1795_v45 }
 0x294   :  { %v2571_v41 = vpop.eup %2570  ;;  %v1782_v35 = vadd.f32 %v2567_v12, %v1781_v43  ;;  %2144 = vrot.lane.b32.xlu0 %v1995_v3, %s2596_s28 }
 0x295   :  { %v2573_v62 = vpop.eup %2572  ;;  %v1827_v17 = vmul.f32 0.6931472, %v2571_v41  ;;  %v1797_v2 = vadd.f32 %v2569_v51, %v1796_v63 }
 0x296   :  { %v1786_v13 = vsel %vm4568_vm0, %v2567_v12, %v1782_v35  ;;  %v1998_v37 = vmul.f32 %v2573_v62, %v4557_v61  ;;  %vm2003_vm5 = vweird.f32 %v2573_v62 }
 0x297   :  { %v2575_v0 = vpop.eup %2574  ;;  %v1841_v34 = vadd.f32 %v1827_v17, %v1549_v4  ;;  %v1791_v16 = vsel %vm4563_vm15, %v1790_v20, %v1786_v13  ;;  %v1801_v47 = vsel %vm4582_vm3, %v2569_v51, %v1797_v2  ;;  %vm2004_vm7 = vmor %vm2002_vm6, %vm2003_vm5 }
 0x298   :  { %v1888_v30 = vadd.f32 1.0, %v2575_v0  ;;  %v1792_v39 = vmul.f32 %v1791_v16, %v1602_v42  ;;  %v1999_v18 = vsub.f32 1.0, %v1998_v37  ;;  %v1806_v49 = vsel %vm1803_vm4, %v1805_v14, %v1801_v47  ;;  %v2087_v0 = vpop.permute.xlu0 %2086 }
 0x299   :  { %v2437_v32 = vmul.f32 -1.442695, %v1841_v34  ;;  %v1807_v21 = vmul.f32 %v1806_v49, %v1603_v15  ;;  %v2089_v15 = vpop.permute.xlu1 %2088 }
 0x29a   :  { %2576 = vrcp.f32 %v1888_v30  ;;  %v2000_v19 = vmul.f32 %v2573_v62, %v1999_v18  ;;  %v2021_v61 = vand.u32 2147483647, %v1888_v30  ;;  %v2023_v26 = vand.u32 2147483648, %v1888_v30 }
 0x29b   :  { %2578 = vpow2.f32 %v2437_v32  ;;  %vm2017_vm10 = vweird.f32 %v1888_v30 }
 0x29c   :  { %v1551_v7 = vpop.f32.mrf.mxu3  ;;  %2580 = vlog2.f32 %v1792_v39  ;;  %v2001_v44 = vadd.f32 %v2573_v62, %v2000_v19  ;;  %v2024_v29 = vor.u32 1.1754944e-38, %v2023_v26  ;;  %vm2022_vm12 = vcmp.eq.f32.partialorder %v2021_v61, 8.507059e+37 }
 0x29d   :  { %2582 = vlog2.f32 %v1807_v21  ;;  %v1552_v8 = vadd.f32 %v4279_v24, %v1551_v7 }
 0x29e   :  { %v2005_v6 = vsel %vm2004_vm7, %v2573_v62, %v2001_v44  ;;  %v2095_v62 = vpop.permute.xlu2 %2094 }
 0x29f   :  { %v2010_v55 = vsel %vm2007_vm8, %v2009_v48, %v2005_v6 }
 0x2a0   :  { %v2577_v36 = vpop.eup %2576  ;;  %2146 = vrot.lane.b32.xlu1 %v2010_v55, %s2596_s28  ;;  %v2097_v6 = vpop.permute.xlu0 %2096 }
 0x2a1   :  { %v2579_v10 = vpop.eup %2578  ;;  %v2013_v53 = vmul.f32 %v2577_v36, %v1888_v30  ;;  %vm2018_vm9 = vweird.f32 %v2577_v36  ;;  %v2091_v21 = vpop.permute.xlu1 %2090 }
 0x2a2   :  { %v2581_v40 = vpop.eup %2580  ;;  %v1889_v56 = vadd.f32 1.0, %v2579_v10  ;;  %vm2019_vm11 = vmor %vm2017_vm10, %vm2018_vm9  ;;  %vm2168_vm9 = vcmask 64512   ;;  %vm2181_vm10 = vcmask 97280  }
 0x2a3   :  { %v1829_v42 = vmul.f32 0.6931472, %v2581_v40  ;;  %v2014_v22 = vsub.f32 1.0, %v2013_v53  ;;  %v2583_v12 = vpop.eup %2582 }
 0x2a4   :  { %v1553_v46 = vpop.f32.mrf.mxu3  ;;  %2584 = vrcp.f32 %v1889_v56  ;;  %v1831_v5 = vmul.f32 0.6931472, %v2583_v12  ;;  %v2038_v9 = vand.u32 2147483648, %v1889_v56  ;;  %v2036_v20 = vand.u32 2147483647, %v1889_v56 }
 0x2a5   :  { %v1554_v28 = vadd.f32 %v4279_v24, %v1553_v46  ;;  %v1842_v23 = vadd.f32 %v1829_v42, %v1552_v8  ;;  %v2015_v38 = vmul.f32 %v2577_v36, %v2014_v22  ;;  %vm2032_vm14 = vweird.f32 %v1889_v56 }
 0x2a6   :  { %v2039_v45 = vor.u32 1.1754944e-38, %v2038_v9  ;;  %vm2037_vm0 = vcmp.eq.f32.partialorder %v2036_v20, 8.507059e+37  ;;  %v2101_v34 = vpop.permute.xlu2 %2100 }
 0x2a7   :  { %v2438_v33 = vmul.f32 -1.442695, %v1842_v23  ;;  %v1843_v11 = vadd.f32 %v1831_v5, %v1554_v28  ;;  %v2016_v50 = vadd.f32 %v2577_v36, %v2015_v38 }
 0x2a8   :  { %v2103_v8 = vpop.permute.xlu0 %2102 }
 0x2a9   :  { %2586 = vpow2.f32 %v2438_v33  ;;  %v2439_v51 = vmul.f32 -1.442695, %v1843_v11  ;;  %v2020_v24 = vsel %vm2019_vm11, %v2577_v36, %v2016_v50  ;;  %v2099_v10 = vpop.permute.xlu1 %2098 }
 0x2aa   :  { %v2585_v4 = vpop.eup %2584  ;;  %v2025_v60 = vsel %vm2022_vm12, %v2024_v29, %v2020_v24 }
 0x2ab   :  { %2588 = vpow2.f32 %v2439_v51  ;;  %2148 = vrot.lane.b32.xlu2 %v2025_v60, %s2596_s28  ;;  %v2028_v43 = vmul.f32 %v2585_v4, %v1889_v56  ;;  %vm2033_vm13 = vweird.f32 %v2585_v4 }
 0x2ac   :  { %vm2034_vm15 = vmor %vm2032_vm14, %vm2033_vm13 }
 0x2ad   :  { %v2029_v1 = vsub.f32 1.0, %v2028_v43 }
 0x2ae   :  { %v2107_v55 = vpop.permute.xlu2 %2106 }
 0x2af   :  { %v2587_v31 = vpop.eup %2586  ;;  %v2030_v58 = vmul.f32 %v2585_v4, %v2029_v1 }
 0x2b0   :  { %v1890_v3 = vadd.f32 1.0, %v2587_v31 }
 0x2b1   :  { %v2589_v52 = vpop.eup %2588  ;;  %v2031_v41 = vadd.f32 %v2585_v4, %v2030_v58  ;;  %v2105_v56 = vpop.permute.xlu1 %2104 }
 0x2b2   :  { %2590 = vrcp.f32 %v1890_v3  ;;  %v1891_v35 = vadd.f32 1.0, %v2589_v52  ;;  %v2053_v14 = vand.u32 2147483648, %v1890_v3  ;;  %v2051_v39 = vand.u32 2147483647, %v1890_v3 }
 0x2b3   :  { %v2035_v17 = vsel %vm2034_vm15, %v2585_v4, %v2031_v41  ;;  %vm2047_vm2 = vweird.f32 %v1890_v3 }
 0x2b4   :  { %2592 = vrcp.f32 %v1891_v35  ;;  %v2040_v7 = vsel %vm2037_vm0, %v2039_v45, %v2035_v17  ;;  %v2068_v18 = vand.u32 2147483648, %v1891_v35  ;;  %v2066_v27 = vand.u32 2147483647, %v1891_v35 }
 0x2b5   :  { %2150 = vrot.lane.b32.xlu0 %v2040_v7, %s2596_s28  ;;  %v2054_v47 = vor.u32 1.1754944e-38, %v2053_v14  ;;  %vm2052_vm5 = vcmp.eq.f32.partialorder %v2051_v39, 8.507059e+37  ;;  %vm2062_vm6 = vweird.f32 %v1891_v35 }
 0x2b6   :  { %v2069_v48 = vor.u32 1.1754944e-38, %v2068_v18  ;;  %vm2067_vm8 = vcmp.eq.f32.partialorder %v2066_v27, 8.507059e+37 }
 0x2b8   :  { %v2591_v13 = vpop.eup %2590 }
 0x2b9   :  { %v2043_v63 = vmul.f32 %v2591_v13, %v1890_v3  ;;  %vm2048_vm1 = vweird.f32 %v2591_v13 }
 0x2ba   :  { %v2593_v37 = vpop.eup %2592  ;;  %vm2049_vm4 = vmor %vm2047_vm2, %vm2048_vm1 }
 0x2bb   :  { %v2044_v16 = vsub.f32 1.0, %v2043_v63  ;;  %v2058_v57 = vmul.f32 %v2593_v37, %v1891_v35  ;;  %vm2063_vm3 = vweird.f32 %v2593_v37 }
 0x2bc   :  { %vm2064_vm7 = vmor %vm2062_vm6, %vm2063_vm3 }
 0x2bd   :  { %v2045_v30 = vmul.f32 %v2591_v13, %v2044_v16  ;;  %v2059_v2 = vsub.f32 1.0, %v2058_v57 }
 0x2bf   :  { %v2046_v32 = vadd.f32 %v2591_v13, %v2045_v30  ;;  %v2060_v59 = vmul.f32 %v2593_v37, %v2059_v2 }
 0x2c1   :  { %v2050_v19 = vsel %vm2049_vm4, %v2591_v13, %v2046_v32  ;;  %v2061_v49 = vadd.f32 %v2593_v37, %v2060_v59 }
 0x2c2   :  { %v2055_v44 = vsel %vm2052_vm5, %v2054_v47, %v2050_v19 }
 0x2c3   :  { %2152 = vrot.lane.b32.xlu1 %v2055_v44, %s2596_s28  ;;  %v2065_v36 = vsel %vm2064_vm7, %v2593_v37, %v2061_v49 }
 0x2c4   :  { %v2070_v46 = vsel %vm2067_vm8, %v2069_v48, %v2065_v36 }
 0x2c5   :  { %2154 = vrot.lane.b32.xlu2 %v2070_v46, %s2596_s28 }
 0x2cb   :  { %v2137_v53 = vpop.permute.xlu2 %2136 }
 0x2cc   :  { %v2171_v40 = vsel %vm2168_vm9, %v2089_v15, %v2137_v53 }
 0x2cd   :  { %2184 = vst.msk [vmem:[%s4675_s14 + $0x10] sm:$0xff] %vm2181_vm10, %v2171_v40 }
 0x2d3   :  { %v2133_v42 = vpop.permute.xlu0 %2132 }
 0x2d4   :  { %v2169_v28 = vsel %vm2168_vm9, %v2085_v54, %v2133_v42 }
 0x2d5   :  { %2182 = vst.msk [vmem:[%s4675_s14] sm:$0xff] %vm2181_vm10, %v2169_v28 }
 0x2db   :  { %v2135_v22 = vpop.permute.xlu1 %2134 }
 0x2dc   :  { %v2170_v12 = vsel %vm2168_vm9, %v2087_v0, %v2135_v22 }
 0x2dd   :  { %2183 = vst.msk [vmem:[%s4675_s14 + $0x8] sm:$0xff] %vm2181_vm10, %v2170_v12 }
 0x2e3   :  { %v2143_v61 = vpop.permute.xlu2 %2142 }
 0x2e4   :  { %v2174_v26 = vsel %vm2168_vm9, %v2095_v62, %v2143_v61 }
 0x2e5   :  { %2187 = vst.msk [vmem:[%s4675_s14 + $0x28] sm:$0xff] %vm2181_vm10, %v2174_v26 }
 0x2eb   :  { %v2139_v23 = vpop.permute.xlu0 %2138 }
 0x2ec   :  { %v2172_v5 = vsel %vm2168_vm9, %v2091_v21, %v2139_v23 }
 0x2ed   :  { %2185 = vst.msk [vmem:[%s4675_s14 + $0x18] sm:$0xff] %vm2181_vm10, %v2172_v5 }
 0x2f3   :  { %v2141_v38 = vpop.permute.xlu1 %2140 }
 0x2f4   :  { %v2173_v33 = vsel %vm2168_vm9, %v4594_v25, %v2141_v38 }
 0x2f5   :  { %2186 = vst.msk [vmem:[%s4675_s14 + $0x20] sm:$0xff] %vm2181_vm10, %v2173_v33 }
 0x305   :  { %v2149_v11 = vpop.permute.xlu2 %2148 }
 0x306   :  { %v2177_v50 = vsel %vm2168_vm9, %v2101_v34, %v2149_v11  ;;  %v2145_v29 = vpop.permute.xlu0 %2144 }
 0x307   :  { %2190 = vst.msk [vmem:[%s4675_s14 + $0x40] sm:$0xff] %vm2181_vm10, %v2177_v50  ;;  %v2175_v51 = vsel %vm2168_vm9, %v2097_v6, %v2145_v29 }
 0x308   :  { %2188 = vst.msk [vmem:[%s4675_s14 + $0x30] sm:$0xff] %vm2181_vm10, %v2175_v51 }
 0x312   :  { %v2147_v25 = vpop.permute.xlu1 %2146 }
 0x313   :  { %v2176_v24 = vsel %vm2168_vm9, %v2099_v10, %v2147_v25 }
 0x314   :  { %2189 = vst.msk [vmem:[%s4675_s14 + $0x38] sm:$0xff] %vm2181_vm10, %v2176_v24 }
 0x31f   :  { %v2155_v4 = vpop.permute.xlu2 %2154 }
 0x320   :  { %v2180_v60 = vsel %vm2168_vm9, %v2107_v55, %v2155_v4 }
 0x321   :  { %2193 = vst.msk [vmem:[%s4675_s14 + $0x58] sm:$0xff] %vm2181_vm10, %v2180_v60 }
 0x327   :  { %v2151_v43 = vpop.permute.xlu0 %2150 }
 0x328   :  { %v2178_v1 = vsel %vm2168_vm9, %v2103_v8, %v2151_v43 }
 0x329   :  { %2191 = vst.msk [vmem:[%s4675_s14 + $0x48] sm:$0xff] %vm2181_vm10, %v2178_v1 }
 0x335   :  { %v2153_v9 = vpop.permute.xlu1 %2152 }
 0x336   :  { %v2179_v31 = vsel %vm2168_vm9, %v2105_v56, %v2153_v9 }
 0x337   :  { %2192 = vst.msk [vmem:[%s4675_s14 + $0x50] sm:$0xff] %vm2181_vm10, %v2179_v31 }

</bundles_post_ra>
